<compile_context>
chip_gen: v5e
topology: v5e:2x2
jax: 0.10.0
libtpu: 0.0.40
codegen_flags: <defaults>
</compile_context>

<pallas_src>
import functools

import numpy as np
import jax
import jax.numpy as jnp
from jax.experimental import pallas as pl
from jax.experimental.pallas import tpu as pltpu


def predictor_kernel(x_ref, g_ref, lens_ref,
                     wih_ref, whh_ref, blstm_ref,
                     w1h_ref, w1g_ref, b1_ref,
                     w2_ref, b2_ref,
                     wp_ref, bp_ref,
                     out_ref):
    # x_ref is time-major: (T, Bb, Z) so each per-step view is a static
    # leading-dim index (zero-cost ref view), no dynamic slicing in the loop.
    T, Bb, Z = x_ref.shape
    H = whh_ref.shape[0]
    G = 4 * H

    wih = wih_ref[...]                         # (Z, 4H)
    whh = whh_ref[...]                         # (H, 4H)
    # Hoist the (1,4H)->(Bb,4H) bias broadcast out of the loop.
    b_l = jnp.broadcast_to(blstm_ref[...], (Bb, G))

    # Clamp so out-of-range / padded lengths still pick a real timestep.
    t_sel = jnp.clip(lens_ref[...] - 1, 0, T - 1)          # (Bb, 1) int32

    # --- Hoisted input projection: independent of the recurrent state, so the
    # scheduler can run all of these off the serial h@W_hh critical path.
    xw = [jnp.dot(x_ref[t], wih, preferred_element_type=jnp.float32) + b_l
          for t in range(T)]                                # T x (Bb, 4H)

    # --- Fully unrolled LSTM recurrence (T is a small static constant).
    h = jnp.zeros((Bb, H), jnp.float32)
    c = jnp.zeros((Bb, H), jnp.float32)
    h_sel = jnp.zeros((Bb, H), jnp.float32)
    for t in range(T):
        gates = xw[t] + jnp.dot(h, whh, preferred_element_type=jnp.float32)
        # 4H == 128 here: each gate is a 32-lane slice inside one vreg group.
        # TODO(synk): if H grows, align each gate to a 128-lane boundary.
        i_g = jax.nn.sigmoid(gates[:, 0 * H:1 * H])
        f_g = jax.nn.sigmoid(gates[:, 1 * H:2 * H])
        g_g = jnp.tanh(gates[:, 2 * H:3 * H])
        o_g = jax.nn.sigmoid(gates[:, 3 * H:4 * H])
        c = f_g * c + i_g * g_g
        h = o_g * jnp.tanh(c)
        # Online masked select of h at timestep x_lens[i] - 1 (avoids storing
        # all T hidden states and doing a gather at the end).
        h_sel = jnp.where(t_sel == t, h, h_sel)

    # fc[0]: Linear(rnn_size + f_dim -> fc1) + ReLU; the concat([h_last, g])
    # matmul is expressed as a split matmul (no in-kernel concat / relayout).
    hid = jnp.maximum(
        jnp.dot(h_sel, w1h_ref[...], preferred_element_type=jnp.float32)
        + jnp.dot(g_ref[...], w1g_ref[...], preferred_element_type=jnp.float32)
        + b1_ref[...], 0.0)
    # fc[1]: Linear(fc1 -> fc2) + ReLU.
    hid = jnp.maximum(
        jnp.dot(hid, w2_ref[...], preferred_element_type=jnp.float32)
        + b2_ref[...], 0.0)
    # Dropout(p=0.5) in eval mode == identity.
    # Final Linear(fc2 -> 1): VPU multiply + lane reduce (avoids N=1 MXU pass).
    logit = jnp.sum(hid * wp_ref[...], axis=-1, keepdims=True) + bp_ref[...]
    out_ref[...] = jax.nn.sigmoid(logit)


def init_params(key, z_dim, rnn_size, f_dim, fc_sizes):
    """Deterministic init matching PyTorch default shapes / init ranges."""
    H = rnn_size
    fc1_out, fc2_out = fc_sizes
    in_f = H + f_dim
    ks = jax.random.split(key, 10)
    u = lambda k, shp, bound: jax.random.uniform(k, shp, jnp.float32, -bound, bound)

    k_lstm = 1.0 / np.sqrt(H)
    w_ih = u(ks[0], (4 * H, z_dim), k_lstm)     # PyTorch weight_ih_l0
    w_hh = u(ks[1], (4 * H, H), k_lstm)         # PyTorch weight_hh_l0
    b_ih = u(ks[2], (4 * H,), k_lstm)
    b_hh = u(ks[3], (4 * H,), k_lstm)

    k1 = 1.0 / np.sqrt(in_f)
    W1 = u(ks[4], (fc1_out, in_f), k1)
    b1 = u(ks[5], (fc1_out,), k1)
    k2 = 1.0 / np.sqrt(fc1_out)
    W2 = u(ks[6], (fc2_out, fc1_out), k2)
    b2 = u(ks[7], (fc2_out,), k2)
    kp = 1.0 / np.sqrt(fc2_out)
    Wp = u(ks[8], (1, fc2_out), kp)
    bp = u(ks[9], (1,), kp)

    W1_T = W1.T                                  # (in_f, fc1_out)
    params = dict(
        wih=w_ih.T,                              # (Z, 4H)
        whh=w_hh.T,                              # (H, 4H)
        blstm=(b_ih + b_hh)[None, :],            # (1, 4H)
        w1h=W1_T[:H, :],                         # (H, fc1_out)
        w1g=W1_T[H:, :],                         # (f_dim, fc1_out)
        b1=b1[None, :],                          # (1, fc1_out)
        w2=W2.T,                                 # (fc1_out, fc2_out)
        b2=b2[None, :],                          # (1, fc2_out)
        wp=Wp,                                   # (1, fc2_out)  (row vector)
        bp=bp[None, :],                          # (1, 1)
    )
    return params


_WEIGHT_KEYS = ('wih', 'whh', 'blstm', 'w1h', 'w1g', 'b1',
                'w2', 'b2', 'wp', 'bp')


@functools.partial(jax.jit, static_argnames=('batch_block',))
def _predictor_pallas(params, local_encs, global_encs, x_lens, *, batch_block):
    B, T, Z = local_encs.shape
    F = global_encs.shape[1]

    Bp = batch_block * pl.cdiv(B, batch_block)
    pad = Bp - B

    x = local_encs.astype(jnp.float32)
    g = global_encs.astype(jnp.float32)
    lens = x_lens.astype(jnp.int32).reshape(B, 1)
    if pad:
        x = jnp.pad(x, ((0, pad), (0, 0), (0, 0)))
        g = jnp.pad(g, ((0, pad), (0, 0)))
        lens = jnp.pad(lens, ((0, pad), (0, 0)), constant_values=1)

    # Time-major layout: one-time layout plumbing in XLA so every in-kernel
    # per-step access is a static leading-dim view.
    x_tbz = jnp.transpose(x, (1, 0, 2))                      # (T, Bp, Z)

    weights = [params[k] for k in _WEIGHT_KEYS]
    weight_specs = [pl.BlockSpec(w.shape, lambda i: (0, 0)) for w in weights]

    out = pl.pallas_call(
        predictor_kernel,
        out_shape=jax.ShapeDtypeStruct((Bp, 1), jnp.float32),
        grid=(Bp // batch_block,),
        in_specs=[
            pl.BlockSpec((T, batch_block, Z), lambda i: (0, i, 0)),
            pl.BlockSpec((batch_block, F), lambda i: (i, 0)),
            pl.BlockSpec((batch_block, 1), lambda i: (i, 0)),
        ] + weight_specs,
        out_specs=pl.BlockSpec((batch_block, 1), lambda i: (i, 0)),
        compiler_params=pltpu.CompilerParams(
            dimension_semantics=("parallel",)),
    )(x_tbz, g, lens, *weights)
    return out[:B, 0]


def predictor_forward(params, local_encs, global_encs, x_lens, *, batch_block=None):
    B = local_encs.shape[0]
    # Batch tiling: one grid step per batch tile, sharded across TensorCores
    # ("parallel") with weights held VMEM-resident across the grid.  Block is
    # either the whole (padded) batch, or a sublane-aligned (multiple-of-8)
    # tile so the BlockSpec (8,128) constraint is always satisfied.
    if batch_block is None:
        batch_block = B if B <= 128 else 128
    if batch_block < B:
        batch_block = 8 * pl.cdiv(batch_block, 8)
    return _predictor_pallas(params, local_encs, global_encs, x_lens,
                             batch_block=int(batch_block))


def predictor_reference(params, local_encs, global_encs, x_lens):
    """Pure-JAX reference mirroring the PyTorch forward (eval-mode dropout)."""
    B, T, Z = local_encs.shape
    H = params['whh'].shape[0]
    h = jnp.zeros((B, H), jnp.float32)
    c = jnp.zeros((B, H), jnp.float32)
    hs = []
    for t in range(T):
        x_t = local_encs[:, t, :]
        gates = x_t @ params['wih'] + h @ params['whh'] + params['blstm']
        i_g = jax.nn.sigmoid(gates[:, 0 * H:1 * H])
        f_g = jax.nn.sigmoid(gates[:, 1 * H:2 * H])
        g_g = jnp.tanh(gates[:, 2 * H:3 * H])
        o_g = jax.nn.sigmoid(gates[:, 3 * H:4 * H])
        c = f_g * c + i_g * g_g
        h = o_g * jnp.tanh(c)
        hs.append(h)
    hs = jnp.stack(hs, axis=1)                                   # (B, T, H)
    idx = x_lens.astype(jnp.int32) - 1
    h_last = hs[jnp.arange(B), idx, :]                           # (B, H)
    hid = jnp.maximum(h_last @ params['w1h'] + global_encs @ params['w1g']
                      + params['b1'], 0.0)
    hid = jnp.maximum(hid @ params['w2'] + params['b2'], 0.0)
    logit = hid @ params['wp'].T + params['bp']
    return jax.nn.sigmoid(logit)[:, 0]


if __name__ == "__main__":
    # Small shapes consistent with the module's forward.
    B, T = 2, 8
    z_dim, rnn_size, f_dim = 8, 32, 8
    fc_sizes = [32, 8]

    key = jax.random.PRNGKey(0)
    k_p, k_x, k_g, k_x2, k_g2, k_l2 = jax.random.split(key, 6)
    params = init_params(k_p, z_dim, rnn_size, f_dim, fc_sizes)

    local_encs = jax.random.normal(k_x, (B, T, z_dim), jnp.float32)
    global_encs = jax.random.normal(k_g, (B, f_dim), jnp.float32)
    x_lens = jnp.array([T, 5], dtype=jnp.int32)

    probs = predictor_forward(params, local_encs, global_encs, x_lens)
    probs = jax.block_until_ready(probs)

    ref = predictor_reference(params, local_encs, global_encs, x_lens)
    np.testing.assert_allclose(np.asarray(probs), np.asarray(ref),
                               rtol=1e-3, atol=1e-3)
    assert probs.shape == (B,)

    # Also exercise the tiled (grid > 1) + padded-batch path.
    B2 = 20
    local2 = jax.random.normal(k_x2, (B2, T, z_dim), jnp.float32)
    global2 = jax.random.normal(k_g2, (B2, f_dim), jnp.float32)
    lens2 = jax.random.randint(k_l2, (B2,), 1, T + 1, dtype=jnp.int32)
    probs2 = jax.block_until_ready(
        predictor_forward(params, local2, global2, lens2, batch_block=8))
    ref2 = predictor_reference(params, local2, global2, lens2)
    np.testing.assert_allclose(np.asarray(probs2), np.asarray(ref2),
                               rtol=1e-3, atol=1e-3)

    print("KERNEL_OK")
</pallas_src>

<mosaic_0001>
module attributes {stable_mosaic.version = 11 : i64} {
  func.func @predictor_kernel(%arg0: i32, %arg1: memref<8x2x8xf32, #tpu.memory_space<vmem>>, %arg2: memref<2x8xf32, #tpu.memory_space<vmem>>, %arg3: memref<2x1xi32, #tpu.memory_space<vmem>>, %arg4: memref<8x128xf32, #tpu.memory_space<vmem>>, %arg5: memref<32x128xf32, #tpu.memory_space<vmem>>, %arg6: memref<1x128xf32, #tpu.memory_space<vmem>>, %arg7: memref<32x32xf32, #tpu.memory_space<vmem>>, %arg8: memref<8x32xf32, #tpu.memory_space<vmem>>, %arg9: memref<1x32xf32, #tpu.memory_space<vmem>>, %arg10: memref<32x8xf32, #tpu.memory_space<vmem>>, %arg11: memref<1x8xf32, #tpu.memory_space<vmem>>, %arg12: memref<1x8xf32, #tpu.memory_space<vmem>>, %arg13: memref<1x1xf32, #tpu.memory_space<vmem>>, %arg14: memref<2x1xf32, #tpu.memory_space<vmem>>) attributes {dimension_semantics = [#tpu.dimension_semantics<parallel>], iteration_bounds = array<i64: 1>, scalar_prefetch = 0 : i64, scratch_operands = 0 : i64, tpu.core_type = #tpu.core_type<tc>, window_params = [{transform_indices = @transform_0, window_bounds = array<i64: 8, 2, 8>}, {transform_indices = @transform_1, window_bounds = array<i64: 2, 8>}, {transform_indices = @transform_2, window_bounds = array<i64: 2, 1>}, {pipeline_mode = #tpu.pipeline_mode<synchronous>, transform_indices = @transform_3, window_bounds = array<i64: 8, 128>}, {pipeline_mode = #tpu.pipeline_mode<synchronous>, transform_indices = @transform_4, window_bounds = array<i64: 32, 128>}, {pipeline_mode = #tpu.pipeline_mode<synchronous>, transform_indices = @transform_5, window_bounds = array<i64: 1, 128>}, {pipeline_mode = #tpu.pipeline_mode<synchronous>, transform_indices = @transform_6, window_bounds = array<i64: 32, 32>}, {pipeline_mode = #tpu.pipeline_mode<synchronous>, transform_indices = @transform_7, window_bounds = array<i64: 8, 32>}, {pipeline_mode = #tpu.pipeline_mode<synchronous>, transform_indices = @transform_8, window_bounds = array<i64: 1, 32>}, {pipeline_mode = #tpu.pipeline_mode<synchronous>, transform_indices = @transform_9, window_bounds = array<i64: 32, 8>}, {pipeline_mode = #tpu.pipeline_mode<synchronous>, transform_indices = @transform_10, window_bounds = array<i64: 1, 8>}, {pipeline_mode = #tpu.pipeline_mode<synchronous>, transform_indices = @transform_11, window_bounds = array<i64: 1, 8>}, {pipeline_mode = #tpu.pipeline_mode<synchronous>, transform_indices = @transform_12, window_bounds = array<i64: 1, 1>}, {transform_indices = @transform_13, window_bounds = array<i64: 2, 1>}]} {
    %c0 = arith.constant 0 : index
    %c0_0 = arith.constant 0 : index
    %0 = vector.load %arg4[%c0, %c0_0] : memref<8x128xf32, #tpu.memory_space<vmem>>, vector<8x128xf32>
    %c0_1 = arith.constant 0 : index
    %c0_2 = arith.constant 0 : index
    %1 = vector.load %arg5[%c0_1, %c0_2] : memref<32x128xf32, #tpu.memory_space<vmem>>, vector<32x128xf32>
    %c0_3 = arith.constant 0 : index
    %c0_4 = arith.constant 0 : index
    %2 = vector.load %arg6[%c0_3, %c0_4] : memref<1x128xf32, #tpu.memory_space<vmem>>, vector<1x128xf32>
    %3 = vector.shape_cast %2 : vector<1x128xf32> to vector<1x128xf32>
    %4 = vector.broadcast %3 : vector<1x128xf32> to vector<2x128xf32>
    %c0_5 = arith.constant 0 : index
    %c0_6 = arith.constant 0 : index
    %5 = vector.load %arg3[%c0_5, %c0_6] : memref<2x1xi32, #tpu.memory_space<vmem>>, vector<2x1xi32>
    %c1_i32 = arith.constant 1 : i32
    %6 = vector.broadcast %c1_i32 : i32 to vector<2x1xi32>
    %7 = arith.subi %5, %6 : vector<2x1xi32>
    %c0_i32 = arith.constant 0 : i32
    %c7_i32 = arith.constant 7 : i32
    %8 = vector.broadcast %c0_i32 : i32 to vector<2x1xi32>
    %9 = arith.maxsi %8, %7 : vector<2x1xi32>
    %10 = vector.broadcast %c7_i32 : i32 to vector<2x1xi32>
    %11 = arith.minsi %10, %9 : vector<2x1xi32>
    %c0_7 = arith.constant 0 : index
    %c0_8 = arith.constant 0 : index
    %c0_9 = arith.constant 0 : index
    %12 = vector.load %arg1[%c0_7, %c0_8, %c0_9] : memref<8x2x8xf32, #tpu.memory_space<vmem>>, vector<1x2x8xf32>
    %13 = vector.shape_cast %12 : vector<1x2x8xf32> to vector<2x8xf32>
    %cst = arith.constant dense<0.000000e+00> : vector<2x128xf32>
    %14 = tpu.matmul %13, %0, %cst {dimension_numbers = #tpu.dot_dimension_numbers<[1], [0], [0], [1], [0, 0, 1, 1], [], []>} : vector<2x8xf32>, vector<8x128xf32>, vector<2x128xf32> -> vector<2x128xf32>
    %15 = arith.addf %14, %4 : vector<2x128xf32>
    %c1 = arith.constant 1 : index
    %c0_10 = arith.constant 0 : index
    %c0_11 = arith.constant 0 : index
    %16 = vector.load %arg1[%c1, %c0_10, %c0_11] : memref<8x2x8xf32, #tpu.memory_space<vmem>>, vector<1x2x8xf32>
    %17 = vector.shape_cast %16 : vector<1x2x8xf32> to vector<2x8xf32>
    %cst_12 = arith.constant dense<0.000000e+00> : vector<2x128xf32>
    %18 = tpu.matmul %17, %0, %cst_12 {dimension_numbers = #tpu.dot_dimension_numbers<[1], [0], [0], [1], [0, 0, 1, 1], [], []>} : vector<2x8xf32>, vector<8x128xf32>, vector<2x128xf32> -> vector<2x128xf32>
    %19 = arith.addf %18, %4 : vector<2x128xf32>
    %c2 = arith.constant 2 : index
    %c0_13 = arith.constant 0 : index
    %c0_14 = arith.constant 0 : index
    %20 = vector.load %arg1[%c2, %c0_13, %c0_14] : memref<8x2x8xf32, #tpu.memory_space<vmem>>, vector<1x2x8xf32>
    %21 = vector.shape_cast %20 : vector<1x2x8xf32> to vector<2x8xf32>
    %cst_15 = arith.constant dense<0.000000e+00> : vector<2x128xf32>
    %22 = tpu.matmul %21, %0, %cst_15 {dimension_numbers = #tpu.dot_dimension_numbers<[1], [0], [0], [1], [0, 0, 1, 1], [], []>} : vector<2x8xf32>, vector<8x128xf32>, vector<2x128xf32> -> vector<2x128xf32>
    %23 = arith.addf %22, %4 : vector<2x128xf32>
    %c3 = arith.constant 3 : index
    %c0_16 = arith.constant 0 : index
    %c0_17 = arith.constant 0 : index
    %24 = vector.load %arg1[%c3, %c0_16, %c0_17] : memref<8x2x8xf32, #tpu.memory_space<vmem>>, vector<1x2x8xf32>
    %25 = vector.shape_cast %24 : vector<1x2x8xf32> to vector<2x8xf32>
    %cst_18 = arith.constant dense<0.000000e+00> : vector<2x128xf32>
    %26 = tpu.matmul %25, %0, %cst_18 {dimension_numbers = #tpu.dot_dimension_numbers<[1], [0], [0], [1], [0, 0, 1, 1], [], []>} : vector<2x8xf32>, vector<8x128xf32>, vector<2x128xf32> -> vector<2x128xf32>
    %27 = arith.addf %26, %4 : vector<2x128xf32>
    %c4 = arith.constant 4 : index
    %c0_19 = arith.constant 0 : index
    %c0_20 = arith.constant 0 : index
    %28 = vector.load %arg1[%c4, %c0_19, %c0_20] : memref<8x2x8xf32, #tpu.memory_space<vmem>>, vector<1x2x8xf32>
    %29 = vector.shape_cast %28 : vector<1x2x8xf32> to vector<2x8xf32>
    %cst_21 = arith.constant dense<0.000000e+00> : vector<2x128xf32>
    %30 = tpu.matmul %29, %0, %cst_21 {dimension_numbers = #tpu.dot_dimension_numbers<[1], [0], [0], [1], [0, 0, 1, 1], [], []>} : vector<2x8xf32>, vector<8x128xf32>, vector<2x128xf32> -> vector<2x128xf32>
    %31 = arith.addf %30, %4 : vector<2x128xf32>
    %c5 = arith.constant 5 : index
    %c0_22 = arith.constant 0 : index
    %c0_23 = arith.constant 0 : index
    %32 = vector.load %arg1[%c5, %c0_22, %c0_23] : memref<8x2x8xf32, #tpu.memory_space<vmem>>, vector<1x2x8xf32>
    %33 = vector.shape_cast %32 : vector<1x2x8xf32> to vector<2x8xf32>
    %cst_24 = arith.constant dense<0.000000e+00> : vector<2x128xf32>
    %34 = tpu.matmul %33, %0, %cst_24 {dimension_numbers = #tpu.dot_dimension_numbers<[1], [0], [0], [1], [0, 0, 1, 1], [], []>} : vector<2x8xf32>, vector<8x128xf32>, vector<2x128xf32> -> vector<2x128xf32>
    %35 = arith.addf %34, %4 : vector<2x128xf32>
    %c6 = arith.constant 6 : index
    %c0_25 = arith.constant 0 : index
    %c0_26 = arith.constant 0 : index
    %36 = vector.load %arg1[%c6, %c0_25, %c0_26] : memref<8x2x8xf32, #tpu.memory_space<vmem>>, vector<1x2x8xf32>
    %37 = vector.shape_cast %36 : vector<1x2x8xf32> to vector<2x8xf32>
    %cst_27 = arith.constant dense<0.000000e+00> : vector<2x128xf32>
    %38 = tpu.matmul %37, %0, %cst_27 {dimension_numbers = #tpu.dot_dimension_numbers<[1], [0], [0], [1], [0, 0, 1, 1], [], []>} : vector<2x8xf32>, vector<8x128xf32>, vector<2x128xf32> -> vector<2x128xf32>
    %39 = arith.addf %38, %4 : vector<2x128xf32>
    %c7 = arith.constant 7 : index
    %c0_28 = arith.constant 0 : index
    %c0_29 = arith.constant 0 : index
    %40 = vector.load %arg1[%c7, %c0_28, %c0_29] : memref<8x2x8xf32, #tpu.memory_space<vmem>>, vector<1x2x8xf32>
    %41 = vector.shape_cast %40 : vector<1x2x8xf32> to vector<2x8xf32>
    %cst_30 = arith.constant dense<0.000000e+00> : vector<2x128xf32>
    %42 = tpu.matmul %41, %0, %cst_30 {dimension_numbers = #tpu.dot_dimension_numbers<[1], [0], [0], [1], [0, 0, 1, 1], [], []>} : vector<2x8xf32>, vector<8x128xf32>, vector<2x128xf32> -> vector<2x128xf32>
    %43 = arith.addf %42, %4 : vector<2x128xf32>
    %cst_31 = arith.constant 0.000000e+00 : f32
    %44 = vector.broadcast %cst_31 : f32 to vector<2x32xf32>
    %cst_32 = arith.constant 0.000000e+00 : f32
    %45 = vector.broadcast %cst_32 : f32 to vector<2x32xf32>
    %cst_33 = arith.constant 0.000000e+00 : f32
    %46 = vector.broadcast %cst_33 : f32 to vector<2x32xf32>
    %cst_34 = arith.constant dense<0.000000e+00> : vector<2x128xf32>
    %47 = tpu.matmul %44, %1, %cst_34 {dimension_numbers = #tpu.dot_dimension_numbers<[1], [0], [0], [1], [0, 0, 1, 1], [], []>} : vector<2x32xf32>, vector<32x128xf32>, vector<2x128xf32> -> vector<2x128xf32>
    %48 = arith.addf %15, %47 : vector<2x128xf32>
    %49 = vector.extract_strided_slice %48 {offsets = [0, 0], sizes = [2, 32], strides = [1, 1]} : vector<2x128xf32> to vector<2x32xf32>
    %50 = arith.negf %49 : vector<2x32xf32>
    %51 = math.exp %50 : vector<2x32xf32>
    %cst_35 = arith.constant 1.000000e+00 : f32
    %52 = vector.broadcast %cst_35 : f32 to vector<2x32xf32>
    %53 = arith.addf %52, %51 : vector<2x32xf32>
    %54 = arith.divf %52, %53 : vector<2x32xf32>
    %55 = vector.extract_strided_slice %48 {offsets = [0, 32], sizes = [2, 32], strides = [1, 1]} : vector<2x128xf32> to vector<2x32xf32>
    %56 = arith.negf %55 : vector<2x32xf32>
    %57 = math.exp %56 : vector<2x32xf32>
    %cst_36 = arith.constant 1.000000e+00 : f32
    %58 = vector.broadcast %cst_36 : f32 to vector<2x32xf32>
    %59 = arith.addf %58, %57 : vector<2x32xf32>
    %60 = arith.divf %58, %59 : vector<2x32xf32>
    %61 = vector.extract_strided_slice %48 {offsets = [0, 64], sizes = [2, 32], strides = [1, 1]} : vector<2x128xf32> to vector<2x32xf32>
    %62 = math.tanh %61 : vector<2x32xf32>
    %63 = vector.extract_strided_slice %48 {offsets = [0, 96], sizes = [2, 32], strides = [1, 1]} : vector<2x128xf32> to vector<2x32xf32>
    %64 = arith.negf %63 : vector<2x32xf32>
    %65 = math.exp %64 : vector<2x32xf32>
    %cst_37 = arith.constant 1.000000e+00 : f32
    %66 = vector.broadcast %cst_37 : f32 to vector<2x32xf32>
    %67 = arith.addf %66, %65 : vector<2x32xf32>
    %68 = arith.divf %66, %67 : vector<2x32xf32>
    %69 = arith.mulf %60, %45 : vector<2x32xf32>
    %70 = arith.mulf %54, %62 : vector<2x32xf32>
    %71 = arith.addf %69, %70 : vector<2x32xf32>
    %72 = math.tanh %71 : vector<2x32xf32>
    %73 = arith.mulf %68, %72 : vector<2x32xf32>
    %c0_i32_38 = arith.constant 0 : i32
    %74 = vector.broadcast %c0_i32_38 : i32 to vector<2x1xi32>
    %75 = arith.cmpi eq, %11, %74 : vector<2x1xi32>
    %76 = vector.shape_cast %75 : vector<2x1xi1> to vector<2x1xi1>
    %77 = vector.broadcast %76 : vector<2x1xi1> to vector<2x32xi1>
    %78 = arith.select %77, %73, %46 : vector<2x32xi1>, vector<2x32xf32>
    %cst_39 = arith.constant dense<0.000000e+00> : vector<2x128xf32>
    %79 = tpu.matmul %73, %1, %cst_39 {dimension_numbers = #tpu.dot_dimension_numbers<[1], [0], [0], [1], [0, 0, 1, 1], [], []>} : vector<2x32xf32>, vector<32x128xf32>, vector<2x128xf32> -> vector<2x128xf32>
    %80 = arith.addf %19, %79 : vector<2x128xf32>
    %81 = vector.extract_strided_slice %80 {offsets = [0, 0], sizes = [2, 32], strides = [1, 1]} : vector<2x128xf32> to vector<2x32xf32>
    %82 = arith.negf %81 : vector<2x32xf32>
    %83 = math.exp %82 : vector<2x32xf32>
    %cst_40 = arith.constant 1.000000e+00 : f32
    %84 = vector.broadcast %cst_40 : f32 to vector<2x32xf32>
    %85 = arith.addf %84, %83 : vector<2x32xf32>
    %86 = arith.divf %84, %85 : vector<2x32xf32>
    %87 = vector.extract_strided_slice %80 {offsets = [0, 32], sizes = [2, 32], strides = [1, 1]} : vector<2x128xf32> to vector<2x32xf32>
    %88 = arith.negf %87 : vector<2x32xf32>
    %89 = math.exp %88 : vector<2x32xf32>
    %cst_41 = arith.constant 1.000000e+00 : f32
    %90 = vector.broadcast %cst_41 : f32 to vector<2x32xf32>
    %91 = arith.addf %90, %89 : vector<2x32xf32>
    %92 = arith.divf %90, %91 : vector<2x32xf32>
    %93 = vector.extract_strided_slice %80 {offsets = [0, 64], sizes = [2, 32], strides = [1, 1]} : vector<2x128xf32> to vector<2x32xf32>
    %94 = math.tanh %93 : vector<2x32xf32>
    %95 = vector.extract_strided_slice %80 {offsets = [0, 96], sizes = [2, 32], strides = [1, 1]} : vector<2x128xf32> to vector<2x32xf32>
    %96 = arith.negf %95 : vector<2x32xf32>
    %97 = math.exp %96 : vector<2x32xf32>
    %cst_42 = arith.constant 1.000000e+00 : f32
    %98 = vector.broadcast %cst_42 : f32 to vector<2x32xf32>
    %99 = arith.addf %98, %97 : vector<2x32xf32>
    %100 = arith.divf %98, %99 : vector<2x32xf32>
    %101 = arith.mulf %92, %71 : vector<2x32xf32>
    %102 = arith.mulf %86, %94 : vector<2x32xf32>
    %103 = arith.addf %101, %102 : vector<2x32xf32>
    %104 = math.tanh %103 : vector<2x32xf32>
    %105 = arith.mulf %100, %104 : vector<2x32xf32>
    %c1_i32_43 = arith.constant 1 : i32
    %106 = vector.broadcast %c1_i32_43 : i32 to vector<2x1xi32>
    %107 = arith.cmpi eq, %11, %106 : vector<2x1xi32>
    %108 = vector.shape_cast %107 : vector<2x1xi1> to vector<2x1xi1>
    %109 = vector.broadcast %108 : vector<2x1xi1> to vector<2x32xi1>
    %110 = arith.select %109, %105, %78 : vector<2x32xi1>, vector<2x32xf32>
    %cst_44 = arith.constant dense<0.000000e+00> : vector<2x128xf32>
    %111 = tpu.matmul %105, %1, %cst_44 {dimension_numbers = #tpu.dot_dimension_numbers<[1], [0], [0], [1], [0, 0, 1, 1], [], []>} : vector<2x32xf32>, vector<32x128xf32>, vector<2x128xf32> -> vector<2x128xf32>
    %112 = arith.addf %23, %111 : vector<2x128xf32>
    %113 = vector.extract_strided_slice %112 {offsets = [0, 0], sizes = [2, 32], strides = [1, 1]} : vector<2x128xf32> to vector<2x32xf32>
    %114 = arith.negf %113 : vector<2x32xf32>
    %115 = math.exp %114 : vector<2x32xf32>
    %cst_45 = arith.constant 1.000000e+00 : f32
    %116 = vector.broadcast %cst_45 : f32 to vector<2x32xf32>
    %117 = arith.addf %116, %115 : vector<2x32xf32>
    %118 = arith.divf %116, %117 : vector<2x32xf32>
    %119 = vector.extract_strided_slice %112 {offsets = [0, 32], sizes = [2, 32], strides = [1, 1]} : vector<2x128xf32> to vector<2x32xf32>
    %120 = arith.negf %119 : vector<2x32xf32>
    %121 = math.exp %120 : vector<2x32xf32>
    %cst_46 = arith.constant 1.000000e+00 : f32
    %122 = vector.broadcast %cst_46 : f32 to vector<2x32xf32>
    %123 = arith.addf %122, %121 : vector<2x32xf32>
    %124 = arith.divf %122, %123 : vector<2x32xf32>
    %125 = vector.extract_strided_slice %112 {offsets = [0, 64], sizes = [2, 32], strides = [1, 1]} : vector<2x128xf32> to vector<2x32xf32>
    %126 = math.tanh %125 : vector<2x32xf32>
    %127 = vector.extract_strided_slice %112 {offsets = [0, 96], sizes = [2, 32], strides = [1, 1]} : vector<2x128xf32> to vector<2x32xf32>
    %128 = arith.negf %127 : vector<2x32xf32>
    %129 = math.exp %128 : vector<2x32xf32>
    %cst_47 = arith.constant 1.000000e+00 : f32
    %130 = vector.broadcast %cst_47 : f32 to vector<2x32xf32>
    %131 = arith.addf %130, %129 : vector<2x32xf32>
    %132 = arith.divf %130, %131 : vector<2x32xf32>
    %133 = arith.mulf %124, %103 : vector<2x32xf32>
    %134 = arith.mulf %118, %126 : vector<2x32xf32>
    %135 = arith.addf %133, %134 : vector<2x32xf32>
    %136 = math.tanh %135 : vector<2x32xf32>
    %137 = arith.mulf %132, %136 : vector<2x32xf32>
    %c2_i32 = arith.constant 2 : i32
    %138 = vector.broadcast %c2_i32 : i32 to vector<2x1xi32>
    %139 = arith.cmpi eq, %11, %138 : vector<2x1xi32>
    %140 = vector.shape_cast %139 : vector<2x1xi1> to vector<2x1xi1>
    %141 = vector.broadcast %140 : vector<2x1xi1> to vector<2x32xi1>
    %142 = arith.select %141, %137, %110 : vector<2x32xi1>, vector<2x32xf32>
    %cst_48 = arith.constant dense<0.000000e+00> : vector<2x128xf32>
    %143 = tpu.matmul %137, %1, %cst_48 {dimension_numbers = #tpu.dot_dimension_numbers<[1], [0], [0], [1], [0, 0, 1, 1], [], []>} : vector<2x32xf32>, vector<32x128xf32>, vector<2x128xf32> -> vector<2x128xf32>
    %144 = arith.addf %27, %143 : vector<2x128xf32>
    %145 = vector.extract_strided_slice %144 {offsets = [0, 0], sizes = [2, 32], strides = [1, 1]} : vector<2x128xf32> to vector<2x32xf32>
    %146 = arith.negf %145 : vector<2x32xf32>
    %147 = math.exp %146 : vector<2x32xf32>
    %cst_49 = arith.constant 1.000000e+00 : f32
    %148 = vector.broadcast %cst_49 : f32 to vector<2x32xf32>
    %149 = arith.addf %148, %147 : vector<2x32xf32>
    %150 = arith.divf %148, %149 : vector<2x32xf32>
    %151 = vector.extract_strided_slice %144 {offsets = [0, 32], sizes = [2, 32], strides = [1, 1]} : vector<2x128xf32> to vector<2x32xf32>
    %152 = arith.negf %151 : vector<2x32xf32>
    %153 = math.exp %152 : vector<2x32xf32>
    %cst_50 = arith.constant 1.000000e+00 : f32
    %154 = vector.broadcast %cst_50 : f32 to vector<2x32xf32>
    %155 = arith.addf %154, %153 : vector<2x32xf32>
    %156 = arith.divf %154, %155 : vector<2x32xf32>
    %157 = vector.extract_strided_slice %144 {offsets = [0, 64], sizes = [2, 32], strides = [1, 1]} : vector<2x128xf32> to vector<2x32xf32>
    %158 = math.tanh %157 : vector<2x32xf32>
    %159 = vector.extract_strided_slice %144 {offsets = [0, 96], sizes = [2, 32], strides = [1, 1]} : vector<2x128xf32> to vector<2x32xf32>
    %160 = arith.negf %159 : vector<2x32xf32>
    %161 = math.exp %160 : vector<2x32xf32>
    %cst_51 = arith.constant 1.000000e+00 : f32
    %162 = vector.broadcast %cst_51 : f32 to vector<2x32xf32>
    %163 = arith.addf %162, %161 : vector<2x32xf32>
    %164 = arith.divf %162, %163 : vector<2x32xf32>
    %165 = arith.mulf %156, %135 : vector<2x32xf32>
    %166 = arith.mulf %150, %158 : vector<2x32xf32>
    %167 = arith.addf %165, %166 : vector<2x32xf32>
    %168 = math.tanh %167 : vector<2x32xf32>
    %169 = arith.mulf %164, %168 : vector<2x32xf32>
    %c3_i32 = arith.constant 3 : i32
    %170 = vector.broadcast %c3_i32 : i32 to vector<2x1xi32>
    %171 = arith.cmpi eq, %11, %170 : vector<2x1xi32>
    %172 = vector.shape_cast %171 : vector<2x1xi1> to vector<2x1xi1>
    %173 = vector.broadcast %172 : vector<2x1xi1> to vector<2x32xi1>
    %174 = arith.select %173, %169, %142 : vector<2x32xi1>, vector<2x32xf32>
    %cst_52 = arith.constant dense<0.000000e+00> : vector<2x128xf32>
    %175 = tpu.matmul %169, %1, %cst_52 {dimension_numbers = #tpu.dot_dimension_numbers<[1], [0], [0], [1], [0, 0, 1, 1], [], []>} : vector<2x32xf32>, vector<32x128xf32>, vector<2x128xf32> -> vector<2x128xf32>
    %176 = arith.addf %31, %175 : vector<2x128xf32>
    %177 = vector.extract_strided_slice %176 {offsets = [0, 0], sizes = [2, 32], strides = [1, 1]} : vector<2x128xf32> to vector<2x32xf32>
    %178 = arith.negf %177 : vector<2x32xf32>
    %179 = math.exp %178 : vector<2x32xf32>
    %cst_53 = arith.constant 1.000000e+00 : f32
    %180 = vector.broadcast %cst_53 : f32 to vector<2x32xf32>
    %181 = arith.addf %180, %179 : vector<2x32xf32>
    %182 = arith.divf %180, %181 : vector<2x32xf32>
    %183 = vector.extract_strided_slice %176 {offsets = [0, 32], sizes = [2, 32], strides = [1, 1]} : vector<2x128xf32> to vector<2x32xf32>
    %184 = arith.negf %183 : vector<2x32xf32>
    %185 = math.exp %184 : vector<2x32xf32>
    %cst_54 = arith.constant 1.000000e+00 : f32
    %186 = vector.broadcast %cst_54 : f32 to vector<2x32xf32>
    %187 = arith.addf %186, %185 : vector<2x32xf32>
    %188 = arith.divf %186, %187 : vector<2x32xf32>
    %189 = vector.extract_strided_slice %176 {offsets = [0, 64], sizes = [2, 32], strides = [1, 1]} : vector<2x128xf32> to vector<2x32xf32>
    %190 = math.tanh %189 : vector<2x32xf32>
    %191 = vector.extract_strided_slice %176 {offsets = [0, 96], sizes = [2, 32], strides = [1, 1]} : vector<2x128xf32> to vector<2x32xf32>
    %192 = arith.negf %191 : vector<2x32xf32>
    %193 = math.exp %192 : vector<2x32xf32>
    %cst_55 = arith.constant 1.000000e+00 : f32
    %194 = vector.broadcast %cst_55 : f32 to vector<2x32xf32>
    %195 = arith.addf %194, %193 : vector<2x32xf32>
    %196 = arith.divf %194, %195 : vector<2x32xf32>
    %197 = arith.mulf %188, %167 : vector<2x32xf32>
    %198 = arith.mulf %182, %190 : vector<2x32xf32>
    %199 = arith.addf %197, %198 : vector<2x32xf32>
    %200 = math.tanh %199 : vector<2x32xf32>
    %201 = arith.mulf %196, %200 : vector<2x32xf32>
    %c4_i32 = arith.constant 4 : i32
    %202 = vector.broadcast %c4_i32 : i32 to vector<2x1xi32>
    %203 = arith.cmpi eq, %11, %202 : vector<2x1xi32>
    %204 = vector.shape_cast %203 : vector<2x1xi1> to vector<2x1xi1>
    %205 = vector.broadcast %204 : vector<2x1xi1> to vector<2x32xi1>
    %206 = arith.select %205, %201, %174 : vector<2x32xi1>, vector<2x32xf32>
    %cst_56 = arith.constant dense<0.000000e+00> : vector<2x128xf32>
    %207 = tpu.matmul %201, %1, %cst_56 {dimension_numbers = #tpu.dot_dimension_numbers<[1], [0], [0], [1], [0, 0, 1, 1], [], []>} : vector<2x32xf32>, vector<32x128xf32>, vector<2x128xf32> -> vector<2x128xf32>
    %208 = arith.addf %35, %207 : vector<2x128xf32>
    %209 = vector.extract_strided_slice %208 {offsets = [0, 0], sizes = [2, 32], strides = [1, 1]} : vector<2x128xf32> to vector<2x32xf32>
    %210 = arith.negf %209 : vector<2x32xf32>
    %211 = math.exp %210 : vector<2x32xf32>
    %cst_57 = arith.constant 1.000000e+00 : f32
    %212 = vector.broadcast %cst_57 : f32 to vector<2x32xf32>
    %213 = arith.addf %212, %211 : vector<2x32xf32>
    %214 = arith.divf %212, %213 : vector<2x32xf32>
    %215 = vector.extract_strided_slice %208 {offsets = [0, 32], sizes = [2, 32], strides = [1, 1]} : vector<2x128xf32> to vector<2x32xf32>
    %216 = arith.negf %215 : vector<2x32xf32>
    %217 = math.exp %216 : vector<2x32xf32>
    %cst_58 = arith.constant 1.000000e+00 : f32
    %218 = vector.broadcast %cst_58 : f32 to vector<2x32xf32>
    %219 = arith.addf %218, %217 : vector<2x32xf32>
    %220 = arith.divf %218, %219 : vector<2x32xf32>
    %221 = vector.extract_strided_slice %208 {offsets = [0, 64], sizes = [2, 32], strides = [1, 1]} : vector<2x128xf32> to vector<2x32xf32>
    %222 = math.tanh %221 : vector<2x32xf32>
    %223 = vector.extract_strided_slice %208 {offsets = [0, 96], sizes = [2, 32], strides = [1, 1]} : vector<2x128xf32> to vector<2x32xf32>
    %224 = arith.negf %223 : vector<2x32xf32>
    %225 = math.exp %224 : vector<2x32xf32>
    %cst_59 = arith.constant 1.000000e+00 : f32
    %226 = vector.broadcast %cst_59 : f32 to vector<2x32xf32>
    %227 = arith.addf %226, %225 : vector<2x32xf32>
    %228 = arith.divf %226, %227 : vector<2x32xf32>
    %229 = arith.mulf %220, %199 : vector<2x32xf32>
    %230 = arith.mulf %214, %222 : vector<2x32xf32>
    %231 = arith.addf %229, %230 : vector<2x32xf32>
    %232 = math.tanh %231 : vector<2x32xf32>
    %233 = arith.mulf %228, %232 : vector<2x32xf32>
    %c5_i32 = arith.constant 5 : i32
    %234 = vector.broadcast %c5_i32 : i32 to vector<2x1xi32>
    %235 = arith.cmpi eq, %11, %234 : vector<2x1xi32>
    %236 = vector.shape_cast %235 : vector<2x1xi1> to vector<2x1xi1>
    %237 = vector.broadcast %236 : vector<2x1xi1> to vector<2x32xi1>
    %238 = arith.select %237, %233, %206 : vector<2x32xi1>, vector<2x32xf32>
    %cst_60 = arith.constant dense<0.000000e+00> : vector<2x128xf32>
    %239 = tpu.matmul %233, %1, %cst_60 {dimension_numbers = #tpu.dot_dimension_numbers<[1], [0], [0], [1], [0, 0, 1, 1], [], []>} : vector<2x32xf32>, vector<32x128xf32>, vector<2x128xf32> -> vector<2x128xf32>
    %240 = arith.addf %39, %239 : vector<2x128xf32>
    %241 = vector.extract_strided_slice %240 {offsets = [0, 0], sizes = [2, 32], strides = [1, 1]} : vector<2x128xf32> to vector<2x32xf32>
    %242 = arith.negf %241 : vector<2x32xf32>
    %243 = math.exp %242 : vector<2x32xf32>
    %cst_61 = arith.constant 1.000000e+00 : f32
    %244 = vector.broadcast %cst_61 : f32 to vector<2x32xf32>
    %245 = arith.addf %244, %243 : vector<2x32xf32>
    %246 = arith.divf %244, %245 : vector<2x32xf32>
    %247 = vector.extract_strided_slice %240 {offsets = [0, 32], sizes = [2, 32], strides = [1, 1]} : vector<2x128xf32> to vector<2x32xf32>
    %248 = arith.negf %247 : vector<2x32xf32>
    %249 = math.exp %248 : vector<2x32xf32>
    %cst_62 = arith.constant 1.000000e+00 : f32
    %250 = vector.broadcast %cst_62 : f32 to vector<2x32xf32>
    %251 = arith.addf %250, %249 : vector<2x32xf32>
    %252 = arith.divf %250, %251 : vector<2x32xf32>
    %253 = vector.extract_strided_slice %240 {offsets = [0, 64], sizes = [2, 32], strides = [1, 1]} : vector<2x128xf32> to vector<2x32xf32>
    %254 = math.tanh %253 : vector<2x32xf32>
    %255 = vector.extract_strided_slice %240 {offsets = [0, 96], sizes = [2, 32], strides = [1, 1]} : vector<2x128xf32> to vector<2x32xf32>
    %256 = arith.negf %255 : vector<2x32xf32>
    %257 = math.exp %256 : vector<2x32xf32>
    %cst_63 = arith.constant 1.000000e+00 : f32
    %258 = vector.broadcast %cst_63 : f32 to vector<2x32xf32>
    %259 = arith.addf %258, %257 : vector<2x32xf32>
    %260 = arith.divf %258, %259 : vector<2x32xf32>
    %261 = arith.mulf %252, %231 : vector<2x32xf32>
    %262 = arith.mulf %246, %254 : vector<2x32xf32>
    %263 = arith.addf %261, %262 : vector<2x32xf32>
    %264 = math.tanh %263 : vector<2x32xf32>
    %265 = arith.mulf %260, %264 : vector<2x32xf32>
    %c6_i32 = arith.constant 6 : i32
    %266 = vector.broadcast %c6_i32 : i32 to vector<2x1xi32>
    %267 = arith.cmpi eq, %11, %266 : vector<2x1xi32>
    %268 = vector.shape_cast %267 : vector<2x1xi1> to vector<2x1xi1>
    %269 = vector.broadcast %268 : vector<2x1xi1> to vector<2x32xi1>
    %270 = arith.select %269, %265, %238 : vector<2x32xi1>, vector<2x32xf32>
    %cst_64 = arith.constant dense<0.000000e+00> : vector<2x128xf32>
    %271 = tpu.matmul %265, %1, %cst_64 {dimension_numbers = #tpu.dot_dimension_numbers<[1], [0], [0], [1], [0, 0, 1, 1], [], []>} : vector<2x32xf32>, vector<32x128xf32>, vector<2x128xf32> -> vector<2x128xf32>
    %272 = arith.addf %43, %271 : vector<2x128xf32>
    %273 = vector.extract_strided_slice %272 {offsets = [0, 0], sizes = [2, 32], strides = [1, 1]} : vector<2x128xf32> to vector<2x32xf32>
    %274 = arith.negf %273 : vector<2x32xf32>
    %275 = math.exp %274 : vector<2x32xf32>
    %cst_65 = arith.constant 1.000000e+00 : f32
    %276 = vector.broadcast %cst_65 : f32 to vector<2x32xf32>
    %277 = arith.addf %276, %275 : vector<2x32xf32>
    %278 = arith.divf %276, %277 : vector<2x32xf32>
    %279 = vector.extract_strided_slice %272 {offsets = [0, 32], sizes = [2, 32], strides = [1, 1]} : vector<2x128xf32> to vector<2x32xf32>
    %280 = arith.negf %279 : vector<2x32xf32>
    %281 = math.exp %280 : vector<2x32xf32>
    %cst_66 = arith.constant 1.000000e+00 : f32
    %282 = vector.broadcast %cst_66 : f32 to vector<2x32xf32>
    %283 = arith.addf %282, %281 : vector<2x32xf32>
    %284 = arith.divf %282, %283 : vector<2x32xf32>
    %285 = vector.extract_strided_slice %272 {offsets = [0, 64], sizes = [2, 32], strides = [1, 1]} : vector<2x128xf32> to vector<2x32xf32>
    %286 = math.tanh %285 : vector<2x32xf32>
    %287 = vector.extract_strided_slice %272 {offsets = [0, 96], sizes = [2, 32], strides = [1, 1]} : vector<2x128xf32> to vector<2x32xf32>
    %288 = arith.negf %287 : vector<2x32xf32>
    %289 = math.exp %288 : vector<2x32xf32>
    %cst_67 = arith.constant 1.000000e+00 : f32
    %290 = vector.broadcast %cst_67 : f32 to vector<2x32xf32>
    %291 = arith.addf %290, %289 : vector<2x32xf32>
    %292 = arith.divf %290, %291 : vector<2x32xf32>
    %293 = arith.mulf %284, %263 : vector<2x32xf32>
    %294 = arith.mulf %278, %286 : vector<2x32xf32>
    %295 = arith.addf %293, %294 : vector<2x32xf32>
    %296 = math.tanh %295 : vector<2x32xf32>
    %297 = arith.mulf %292, %296 : vector<2x32xf32>
    %c7_i32_68 = arith.constant 7 : i32
    %298 = vector.broadcast %c7_i32_68 : i32 to vector<2x1xi32>
    %299 = arith.cmpi eq, %11, %298 : vector<2x1xi32>
    %300 = vector.shape_cast %299 : vector<2x1xi1> to vector<2x1xi1>
    %301 = vector.broadcast %300 : vector<2x1xi1> to vector<2x32xi1>
    %302 = arith.select %301, %297, %270 : vector<2x32xi1>, vector<2x32xf32>
    %c0_69 = arith.constant 0 : index
    %c0_70 = arith.constant 0 : index
    %303 = vector.load %arg7[%c0_69, %c0_70] : memref<32x32xf32, #tpu.memory_space<vmem>>, vector<32x32xf32>
    %cst_71 = arith.constant dense<0.000000e+00> : vector<2x32xf32>
    %304 = tpu.matmul %302, %303, %cst_71 {dimension_numbers = #tpu.dot_dimension_numbers<[1], [0], [0], [1], [0, 0, 1, 1], [], []>} : vector<2x32xf32>, vector<32x32xf32>, vector<2x32xf32> -> vector<2x32xf32>
    %c0_72 = arith.constant 0 : index
    %c0_73 = arith.constant 0 : index
    %305 = vector.load %arg2[%c0_72, %c0_73] : memref<2x8xf32, #tpu.memory_space<vmem>>, vector<2x8xf32>
    %c0_74 = arith.constant 0 : index
    %c0_75 = arith.constant 0 : index
    %306 = vector.load %arg8[%c0_74, %c0_75] : memref<8x32xf32, #tpu.memory_space<vmem>>, vector<8x32xf32>
    %cst_76 = arith.constant dense<0.000000e+00> : vector<2x32xf32>
    %307 = tpu.matmul %305, %306, %cst_76 {dimension_numbers = #tpu.dot_dimension_numbers<[1], [0], [0], [1], [0, 0, 1, 1], [], []>} : vector<2x8xf32>, vector<8x32xf32>, vector<2x32xf32> -> vector<2x32xf32>
    %308 = arith.addf %304, %307 : vector<2x32xf32>
    %c0_77 = arith.constant 0 : index
    %c0_78 = arith.constant 0 : index
    %309 = vector.load %arg9[%c0_77, %c0_78] : memref<1x32xf32, #tpu.memory_space<vmem>>, vector<1x32xf32>
    %310 = vector.broadcast %309 : vector<1x32xf32> to vector<2x32xf32>
    %311 = arith.addf %308, %310 : vector<2x32xf32>
    %cst_79 = arith.constant 0.000000e+00 : f32
    %312 = vector.broadcast %cst_79 : f32 to vector<2x32xf32>
    %313 = arith.maximumf %311, %312 : vector<2x32xf32>
    %c0_80 = arith.constant 0 : index
    %c0_81 = arith.constant 0 : index
    %314 = vector.load %arg10[%c0_80, %c0_81] : memref<32x8xf32, #tpu.memory_space<vmem>>, vector<32x8xf32>
    %cst_82 = arith.constant dense<0.000000e+00> : vector<2x8xf32>
    %315 = tpu.matmul %313, %314, %cst_82 {dimension_numbers = #tpu.dot_dimension_numbers<[1], [0], [0], [1], [0, 0, 1, 1], [], []>} : vector<2x32xf32>, vector<32x8xf32>, vector<2x8xf32> -> vector<2x8xf32>
    %c0_83 = arith.constant 0 : index
    %c0_84 = arith.constant 0 : index
    %316 = vector.load %arg11[%c0_83, %c0_84] : memref<1x8xf32, #tpu.memory_space<vmem>>, vector<1x8xf32>
    %317 = vector.broadcast %316 : vector<1x8xf32> to vector<2x8xf32>
    %318 = arith.addf %315, %317 : vector<2x8xf32>
    %cst_85 = arith.constant 0.000000e+00 : f32
    %319 = vector.broadcast %cst_85 : f32 to vector<2x8xf32>
    %320 = arith.maximumf %318, %319 : vector<2x8xf32>
    %c0_86 = arith.constant 0 : index
    %c0_87 = arith.constant 0 : index
    %321 = vector.load %arg12[%c0_86, %c0_87] : memref<1x8xf32, #tpu.memory_space<vmem>>, vector<1x8xf32>
    %322 = vector.broadcast %321 : vector<1x8xf32> to vector<2x8xf32>
    %323 = arith.mulf %320, %322 : vector<2x8xf32>
    %cst_88 = arith.constant dense<0.000000e+00> : vector<2xf32>
    %324 = vector.multi_reduction <add>, %323, %cst_88 [1] : vector<2x8xf32> to vector<2xf32>
    %325 = vector.shape_cast %324 : vector<2xf32> to vector<2x1xf32>
    %c0_89 = arith.constant 0 : index
    %c0_90 = arith.constant 0 : index
    %326 = vector.load %arg13[%c0_89, %c0_90] : memref<1x1xf32, #tpu.memory_space<vmem>>, vector<1x1xf32>
    %327 = vector.broadcast %326 : vector<1x1xf32> to vector<2x1xf32>
    %328 = arith.addf %325, %327 : vector<2x1xf32>
    %329 = arith.negf %328 : vector<2x1xf32>
    %330 = math.exp %329 : vector<2x1xf32>
    %cst_91 = arith.constant 1.000000e+00 : f32
    %331 = vector.broadcast %cst_91 : f32 to vector<2x1xf32>
    %332 = arith.addf %331, %330 : vector<2x1xf32>
    %333 = arith.divf %331, %332 : vector<2x1xf32>
    %c0_92 = arith.constant 0 : index
    %c0_93 = arith.constant 0 : index
    %334 = vector.load %arg14[%c0_92, %c0_93] : memref<2x1xf32, #tpu.memory_space<vmem>>, vector<2x1xf32>
    tpu.vector_store %arg14[%c0_92, %c0_93], %333 {strides = array<i32>} : memref<2x1xf32, #tpu.memory_space<vmem>>, vector<2x1xf32>,
    return
  }
  func.func @transform_0(%arg0: i32) -> (i32, i32, i32) {
    %c0_i32 = arith.constant 0 : i32
    %c0_i32_0 = arith.constant 0 : i32
    %c0_i32_1 = arith.constant 0 : i32
    return %c0_i32, %arg0, %c0_i32_0 : i32, i32, i32
  }
  func.func @transform_1(%arg0: i32) -> (i32, i32) {
    %c0_i32 = arith.constant 0 : i32
    %c0_i32_0 = arith.constant 0 : i32
    return %arg0, %c0_i32 : i32, i32
  }
  func.func @transform_2(%arg0: i32) -> (i32, i32) {
    %c0_i32 = arith.constant 0 : i32
    %c0_i32_0 = arith.constant 0 : i32
    return %arg0, %c0_i32 : i32, i32
  }
  func.func @transform_3(%arg0: i32) -> (i32, i32) {
    %c0_i32 = arith.constant 0 : i32
    %c0_i32_0 = arith.constant 0 : i32
    %c0_i32_1 = arith.constant 0 : i32
    return %c0_i32, %c0_i32_0 : i32, i32
  }
  func.func @transform_4(%arg0: i32) -> (i32, i32) {
    %c0_i32 = arith.constant 0 : i32
    %c0_i32_0 = arith.constant 0 : i32
    %c0_i32_1 = arith.constant 0 : i32
    return %c0_i32, %c0_i32_0 : i32, i32
  }
  func.func @transform_5(%arg0: i32) -> (i32, i32) {
    %c0_i32 = arith.constant 0 : i32
    %c0_i32_0 = arith.constant 0 : i32
    %c0_i32_1 = arith.constant 0 : i32
    return %c0_i32, %c0_i32_0 : i32, i32
  }
  func.func @transform_6(%arg0: i32) -> (i32, i32) {
    %c0_i32 = arith.constant 0 : i32
    %c0_i32_0 = arith.constant 0 : i32
    %c0_i32_1 = arith.constant 0 : i32
    return %c0_i32, %c0_i32_0 : i32, i32
  }
  func.func @transform_7(%arg0: i32) -> (i32, i32) {
    %c0_i32 = arith.constant 0 : i32
    %c0_i32_0 = arith.constant 0 : i32
    %c0_i32_1 = arith.constant 0 : i32
    return %c0_i32, %c0_i32_0 : i32, i32
  }
  func.func @transform_8(%arg0: i32) -> (i32, i32) {
    %c0_i32 = arith.constant 0 : i32
    %c0_i32_0 = arith.constant 0 : i32
    %c0_i32_1 = arith.constant 0 : i32
    return %c0_i32, %c0_i32_0 : i32, i32
  }
  func.func @transform_9(%arg0: i32) -> (i32, i32) {
    %c0_i32 = arith.constant 0 : i32
    %c0_i32_0 = arith.constant 0 : i32
    %c0_i32_1 = arith.constant 0 : i32
    return %c0_i32, %c0_i32_0 : i32, i32
  }
  func.func @transform_10(%arg0: i32) -> (i32, i32) {
    %c0_i32 = arith.constant 0 : i32
    %c0_i32_0 = arith.constant 0 : i32
    %c0_i32_1 = arith.constant 0 : i32
    return %c0_i32, %c0_i32_0 : i32, i32
  }
  func.func @transform_11(%arg0: i32) -> (i32, i32) {
    %c0_i32 = arith.constant 0 : i32
    %c0_i32_0 = arith.constant 0 : i32
    %c0_i32_1 = arith.constant 0 : i32
    return %c0_i32, %c0_i32_0 : i32, i32
  }
  func.func @transform_12(%arg0: i32) -> (i32, i32) {
    %c0_i32 = arith.constant 0 : i32
    %c0_i32_0 = arith.constant 0 : i32
    %c0_i32_1 = arith.constant 0 : i32
    return %c0_i32, %c0_i32_0 : i32, i32
  }
  func.func @transform_13(%arg0: i32) -> (i32, i32) {
    %c0_i32 = arith.constant 0 : i32
    %c0_i32_0 = arith.constant 0 : i32
    return %arg0, %c0_i32 : i32, i32
  }
}

</mosaic_0001>

<bundles_post_ra>
// kernel: _predictor_pallas.1
= control target key start
LH: loop header
LB: loop body
LE: loop exit
PB: predicated region body
PF: predicated region fallthrough
CT: control target
= control target key end

     0   :  { %s1510_s0 = inlined_call_operand.vmem [shape: f32[8,2,8], index: 0, kind: input, shape index: {}]   ;;  %s1511_s1 = inlined_call_operand.vmem [shape: f32[2,8], index: 1, kind: input, shape index: {}]   ;;  %s1512_s2 = inlined_call_operand.vmem [shape: s32[2,1], index: 2, kind: input, shape index: {}]   ;;  %s1513_s3 = inlined_call_operand.vmem [shape: f32[8,128], index: 3, kind: input, shape index: {}]   ;;  %s1514_s4 = inlined_call_operand.vmem [shape: f32[32,128], index: 4, kind: input, shape index: {}]   ;;  %s1515_s5 = inlined_call_operand.vmem [shape: f32[1,128], index: 5, kind: input, shape index: {}]   ;;  %s1516_s6 = inlined_call_operand.vmem [shape: f32[32,32], index: 6, kind: input, shape index: {}]   ;;  %s1517_s7 = inlined_call_operand.hbm [shape: f32[8,32], index: 7, kind: input, shape index: {}]   ;;  %s1518_s8 = inlined_call_operand.hbm [shape: f32[1,32], index: 8, kind: input, shape index: {}]   ;;  %s1519_s9 = inlined_call_operand.vmem [shape: f32[32,8], index: 9, kind: input, shape index: {}]   ;;  %s1520_s10 = inlined_call_operand.hbm [shape: f32[1,8], index: 10, kind: input, shape index: {}]   ;;  %s1521_s11 = inlined_call_operand.vmem [shape: f32[1,8], index: 11, kind: input, shape index: {}]   ;;  %s1522_s12 = inlined_call_operand.<no memory space> [shape: f32[1,1], index: 12, kind: input, shape index: {}]   ;;  %s1523_s13 = inlined_call_operand.vmem [shape: f32[2,1], index: 13, kind: output, shape index: {}]  }
   0x1   :  { %v18_v0 = vstv %s1522_s12 }
   0x2   :  { %19 = vst [vmem:[#allocation2] sm:$0x1] %v18_v0 }
   0x3   :  { %20 = vsyncpa [#allocation4], 0 }
   0x4   :  { %21 = vsyncpa [#allocation6], 0  ;;  %s52_s29 = sshll.u32 %s1518_s8, 4  ;;  %s1188_s30 = smov [#allocation5]   ;;  %s53_s29 = int_to_ptr.hbm [resolvable:$true] %s52_s29 }
   0x5   :  { %s54_s14 = sshll.u32 %s1188_s30, 4  ;;  %s41_s17 = sshll.u32 %s1517_s7, 4  ;;  %s55_s14 = int_to_ptr.vmem [resolvable:$true] %s54_s14  ;;  %s42_s17 = int_to_ptr.hbm [resolvable:$true] %s41_s17 }
   0x6   :  { %57 = dma.hbm_to_vmem [thread:$0]  %s53_s29, 16, %s55_s14, [#allocation6]  }
   0x7   :  { %s1189_s18 = smov [#allocation3]   ;;  %s65_s21 = sshll.u32 %s1520_s10, 4  ;;  %s66_s21 = int_to_ptr.hbm [resolvable:$true] %s65_s21 }
   0x8   :  { %s43_s19 = sshll.u32 %s1189_s18, 4  ;;  %s1190_s8 = smov [#allocation7]   ;;  %s44_s19 = int_to_ptr.vmem [resolvable:$true] %s43_s19 }
   0x9   :  { %46 = dma.hbm_to_vmem [thread:$0]  %s42_s17, 128, %s44_s19, [#allocation4]  }
   0xa   :  { %s67_s22 = sshll.u32 %s1190_s8, 4  ;;  %s68_s22 = int_to_ptr.vmem [resolvable:$true] %s67_s22 }
   0xb   :  { %70 = dma.hbm_to_vmem [thread:$0]  %s66_s21, 16, %s68_s22, [#allocation6]  }
   0xc   :  { %1184 = dma.done.wait [#allocation4], 128  }
   0xd   :  { %1185 = vsyncadd [#allocation4], 4294967168 }
   0xe   :  { %1186 = dma.done.wait [#allocation6], 32  }
   0xf   :  { %1187 = vsyncadd [#allocation6], 4294967264  ;;  %vm103_vm0 = vcmask 64512   ;;  %v87_v1 = vld [vmem:[%s1513_s3] sm:$0xff]  ;;  %v1286_v3 = vld [vmem:[%s1514_s4 + $0x18] sm:$0xff]  ;;  %v1191_v8 = vmov 0.0  }
  0x10   :  { %v102_v2 = vld [vmem:[%s1510_s0] sm:$0x3]  ;;  %122 = vmatpush.msra.mxu0 %v87_v1  ;;  %147 = vmatpush.msra.mxu1 %v87_v1  ;;  %v1292_v4 = vld [vmem:[%s1514_s4 + $0x10] sm:$0xff]  ;;  %v1298_v5 = vld [vmem:[%s1514_s4 + $0x8] sm:$0xff]  ;;  %s1192_s18 = smov 64   ;;  %vm302_vm5 = vcmask 261120  }
  0x11   :  { %995 = vmatmul.msk.f32.vlgmr.msra.gmra.mxu0 %vm103_vm0, %v102_v2  ;;  %172 = vmatpush.msra.mxu2 %v87_v1  ;;  %v1002_v6 = vld [vmem:[%s1510_s0 + $0x8] sm:$0x3]  ;;  %v1308_v7 = vld [vmem:[%s1514_s4] sm:$0xff]  ;;  %v1004_v36 = vld [vmem:[%s1510_s0 + $0xa] sm:$0x3] }
  0x12   :  { %247 = vmatpush.msrb.mxu1 %v87_v1  ;;  %222 = vmatpush.msrb.mxu0 %v87_v1  ;;  %v1321_v11 = vld [vmem:[%s1515_s5] ss:$0 sm:$0xff]  ;;  %s1193_s5 = smov 32   ;;  %v996_v35 = vld [vmem:[%s1510_s0 + $0x2] sm:$0x3] }
  0x13   :  { %272 = vmatpush.msrb.mxu2 %v87_v1  ;;  %197 = vmatpush.msra.mxu3 %v87_v1  ;;  %v1006_v2 = vld [vmem:[%s1510_s0 + $0xc] sm:$0x3] }
  0x14   :  { %318 = vmatpush.msra.mxu0 %v1286_v3  ;;  %997 = vmatmul.msk.f32.vlgmr.msra.gmra.mxu1 %vm103_vm0, %v996_v35 }
  0x15   :  { %297 = vmatpush.msrb.mxu3 %v87_v1  ;;  %388 = vmatpush.msra.mxu1 %v1286_v3  ;;  %v998_v1 = vld [vmem:[%s1510_s0 + $0x4] sm:$0x3] }
  0x16   :  { %319 = vmatpush.msra.mxu0 %v1292_v4  ;;  %999 = vmatmul.msk.f32.vlgmr.msra.gmra.mxu2 %vm103_vm0, %v998_v1 }
  0x17   :  { %389 = vmatpush.msra.mxu1 %v1292_v4  ;;  %458 = vmatpush.msra.mxu2 %v1286_v3 }
  0x18   :  { %320 = vmatpush.msra.mxu0 %v1298_v5 }
  0x19   :  { %1003 = vmatmul.msk.f32.vlgmr.msrb.gmra.mxu0 %vm103_vm0, %v1002_v6  ;;  %390 = vmatpush.msra.mxu1 %v1298_v5 }
  0x1a   :  { %321 = vmatpush.msra.mxu0 %v1308_v7  ;;  %459 = vmatpush.msra.mxu2 %v1292_v4 }
  0x1b   :  { %391 = vmatpush.msra.mxu1 %v1308_v7 }
  0x1c   :  { %598 = vmatpush.msrb.mxu0 %v1286_v3  ;;  %1005 = vmatmul.msk.f32.vlgmr.msrb.gmra.mxu1 %vm103_vm0, %v1004_v36 }
  0x1d   :  { %668 = vmatpush.msrb.mxu1 %v1286_v3  ;;  %460 = vmatpush.msra.mxu2 %v1298_v5 }
  0x1e   :  { %599 = vmatpush.msrb.mxu0 %v1292_v4  ;;  %1007 = vmatmul.msk.f32.vlgmr.msrb.gmra.mxu2 %vm103_vm0, %v1006_v2 }
  0x1f   :  { %669 = vmatpush.msrb.mxu1 %v1292_v4  ;;  %461 = vmatpush.msra.mxu2 %v1308_v7 }
  0x20   :  { %600 = vmatpush.msrb.mxu0 %v1298_v5 }
  0x21   :  { %322 = vmatmul.f32.vlgmr.msra.gmra.mxu0 %v1191_v8  ;;  %670 = vmatpush.msrb.mxu1 %v1298_v5 }
  0x22   :  { %601 = vmatpush.msrb.mxu0 %v1308_v7  ;;  %738 = vmatpush.msrb.mxu2 %v1286_v3 }
  0x23   :  { %671 = vmatpush.msrb.mxu1 %v1308_v7 }
  0x24   :  { %739 = vmatpush.msrb.mxu2 %v1292_v4 }
  0x26   :  { %740 = vmatpush.msrb.mxu2 %v1298_v5 }
  0x28   :  { %741 = vmatpush.msrb.mxu2 %v1308_v7 }
  0x8e   :  { %v124_v9 = vpop.f32.mrf.mxu0 }
  0x8f   :  { %v125_v12 = vadd.f32 %v1321_v11, %v124_v9 }
  0x91   :  { %v149_v40 = vpop.f32.mrf.mxu1 }
  0x92   :  { %v150_v42 = vadd.f32 %v1321_v11, %v149_v40 }
  0x96   :  { %v1316_v10 = vpop.f32.mrf.mxu0 }
  0x99   :  { %v1348_v41 = vpop.f32.mrf.mxu1 }
  0x9e   :  { %v323_v13 = vpop.f32.mrf.mxu0 }
  0x9f   :  { %v326_v14 = vadd.f32 %v323_v13, %v125_v12  ;;  %v174_v12 = vpop.f32.mrf.mxu2 }
  0xa1   :  { %1044 = vtanh.f32 %v326_v14  ;;  %v1010_v16 = vmul.f32 -1.442695, %v326_v14  ;;  %v175_v14 = vadd.f32 %v1321_v11, %v174_v12 }
  0xa3   :  { %1046 = vpow2.f32 %v1010_v16 }
  0xa7   :  { %v1045_v15 = vpop.eup %1044  ;;  %v1375_v13 = vpop.f32.mrf.mxu2 }
  0xa8   :  { %349 = vrot.lane.b32.xlu0 %v1045_v15, %s1192_s18 }
  0xa9   :  { %v1047_v17 = vpop.eup %1046 }
  0xaa   :  { %v330_v18 = vadd.f32 1.0, %v1047_v17 }
  0xac   :  { %1048 = vrcp.f32 %v330_v18  ;;  %v342_v24 = vand.u32 2147483648, %v330_v18  ;;  %vm336_vm2 = vweird.f32 %v330_v18  ;;  %v340_v25 = vand.u32 2147483647, %v330_v18 }
  0xae   :  { %v343_v27 = vor.u32 1.1754944e-38, %v342_v24  ;;  %vm341_vm4 = vcmp.eq.f32.partialorder %v340_v25, 8.507059e+37 }
  0xb2   :  { %v1049_v19 = vpop.eup %1048 }
  0xb3   :  { %v332_v20 = vmul.f32 %v1049_v19, %v330_v18  ;;  %vm337_vm1 = vweird.f32 %v1049_v19 }
  0xb4   :  { %vm338_vm3 = vmor %vm336_vm2, %vm337_vm1 }
  0xb5   :  { %v333_v21 = vsub.f32 1.0, %v332_v20 }
  0xb7   :  { %v334_v22 = vmul.f32 %v1049_v19, %v333_v21 }
  0xb9   :  { %v335_v23 = vadd.f32 %v1049_v19, %v334_v22 }
  0xbb   :  { %v339_v26 = vsel %vm338_vm3, %v1049_v19, %v335_v23 }
  0xbc   :  { %v344_v29 = vsel %vm341_vm4, %v343_v27, %v339_v26 }
  0xbd   :  { %v347_v31 = vmul.f32 0.0, %v344_v29 }
 0x11a   :  { %v350_v28 = vpop.permute.xlu0 %349 }
 0x11b   :  { %v352_v30 = vmul.f32 %v350_v28, %v344_v29 }
 0x11d   :  { %354 = vrot.lane.b32.xlu0 %v352_v30, %s1193_s5 }
 0x18f   :  { %v355_v32 = vpop.permute.xlu0 %354 }
 0x190   :  { %v357_v33 = vadd.f32 %v355_v32, %v347_v31 }
 0x192   :  { %1050 = vtanh.f32 %v357_v33 }
 0x198   :  { %v1051_v34 = vpop.eup %1050 }
 0x199   :  { %360 = vrot.lane.b32.xlu1 %v1051_v34, %s1192_s18 }
 0x20b   :  { %v361_v37 = vpop.permute.xlu1 %360 }
 0x20c   :  { %v1343_v38 = vmul.f32 %v361_v37, %v344_v29  ;;  %v1000_v37 = vld [vmem:[%s1510_s0 + $0x6] sm:$0x3] }
 0x20d   :  { %1001 = vmatmul.msk.f32.vlgmr.msra.gmra.mxu3 %vm103_vm0, %v1000_v37  ;;  %v250_v37 = vadd.f32 %v1321_v11, %v1348_v41 }
 0x20e   :  { %372 = vrot.lane.b32.xlu1 %v1343_v38, %s1193_s5  ;;  %528 = vmatpush.msra.mxu3 %v1286_v3 }
 0x210   :  { %529 = vmatpush.msra.mxu3 %v1292_v4 }
 0x212   :  { %530 = vmatpush.msra.mxu3 %v1298_v5 }
 0x214   :  { %531 = vmatpush.msra.mxu3 %v1308_v7 }
 0x280   :  { %v373_v39 = vpop.permute.xlu1 %372 }
 0x281   :  { %1011 = vmatmul.msk.f32.vlgmr.msra.gmra.mxu1 %vm302_vm5, %v373_v39  ;;  %v1008_v39 = vld [vmem:[%s1510_s0 + $0xe] sm:$0x3] }
 0x282   :  { %1009 = vmatmul.msk.f32.vlgmr.msrb.gmra.mxu3 %vm103_vm0, %v1008_v39 }
 0x283   :  { %808 = vmatpush.msrb.mxu3 %v1286_v3 }
 0x285   :  { %809 = vmatpush.msrb.mxu3 %v1292_v4 }
 0x287   :  { %810 = vmatpush.msrb.mxu3 %v1298_v5 }
 0x289   :  { %811 = vmatpush.msrb.mxu3 %v1308_v7 }
 0x2fe   :  { %v393_v43 = vpop.f32.mrf.mxu1 }
 0x2ff   :  { %v396_v44 = vadd.f32 %v393_v43, %v150_v42 }
 0x301   :  { %1052 = vtanh.f32 %v396_v44  ;;  %v1012_v46 = vmul.f32 -1.442695, %v396_v44  ;;  %v199_v44 = vpop.f32.mrf.mxu3 }
 0x302   :  { %v200_v3 = vadd.f32 %v1321_v11, %v199_v44 }
 0x303   :  { %1054 = vpow2.f32 %v1012_v46 }
 0x307   :  { %v1053_v45 = vpop.eup %1052 }
 0x308   :  { %419 = vrot.lane.b32.xlu2 %v1053_v45, %s1192_s18 }
 0x309   :  { %v1055_v47 = vpop.eup %1054  ;;  %v1402_v45 = vpop.f32.mrf.mxu3 }
 0x30a   :  { %v400_v48 = vadd.f32 1.0, %v1055_v47 }
 0x30c   :  { %1056 = vrcp.f32 %v400_v48  ;;  %v412_v54 = vand.u32 2147483648, %v400_v48  ;;  %vm406_vm7 = vweird.f32 %v400_v48  ;;  %v410_v55 = vand.u32 2147483647, %v400_v48 }
 0x30e   :  { %v413_v57 = vor.u32 1.1754944e-38, %v412_v54  ;;  %vm411_vm9 = vcmp.eq.f32.partialorder %v410_v55, 8.507059e+37 }
 0x312   :  { %v1057_v49 = vpop.eup %1056 }
 0x313   :  { %v402_v50 = vmul.f32 %v1057_v49, %v400_v48  ;;  %vm407_vm6 = vweird.f32 %v1057_v49 }
 0x314   :  { %vm408_vm8 = vmor %vm406_vm7, %vm407_vm6 }
 0x315   :  { %v403_v51 = vsub.f32 1.0, %v402_v50 }
 0x317   :  { %v404_v52 = vmul.f32 %v1057_v49, %v403_v51 }
 0x319   :  { %v405_v53 = vadd.f32 %v1057_v49, %v404_v52 }
 0x31b   :  { %v409_v56 = vsel %vm408_vm8, %v1057_v49, %v405_v53 }
 0x31c   :  { %v414_v59 = vsel %vm411_vm9, %v413_v57, %v409_v56 }
 0x31d   :  { %v417_v61 = vmul.f32 %v414_v59, %v357_v33 }
 0x362   :  { %v420_v58 = vpop.permute.xlu2 %419 }
 0x363   :  { %v422_v60 = vmul.f32 %v420_v58, %v414_v59 }
 0x365   :  { %424 = vrot.lane.b32.xlu2 %v422_v60, %s1193_s5 }
 0x3bf   :  { %v425_v62 = vpop.permute.xlu2 %424 }
 0x3c0   :  { %v427_v63 = vadd.f32 %v425_v62, %v417_v61 }
 0x3c2   :  { %1058 = vtanh.f32 %v427_v63 }
 0x3c8   :  { %v1059_v0 = vpop.eup %1058 }
 0x3c9   :  { %430 = vrot.lane.b32.xlu0 %v1059_v0, %s1192_s18 }
 0x43b   :  { %v431_v6 = vpop.permute.xlu0 %430 }
 0x43c   :  { %v1370_v8 = vmul.f32 %v431_v6, %v414_v59 }
 0x43e   :  { %442 = vrot.lane.b32.xlu1 %v1370_v8, %s1193_s5 }
 0x4b0   :  { %v443_v9 = vpop.permute.xlu1 %442 }
 0x4b1   :  { %1013 = vmatmul.msk.f32.vlgmr.msra.gmra.mxu2 %vm302_vm5, %v443_v9  ;;  %v225_v9 = vadd.f32 %v1321_v11, %v1316_v10 }
 0x534   :  { %v463_v15 = vpop.f32.mrf.mxu2 }
 0x535   :  { %v466_v16 = vadd.f32 %v463_v15, %v175_v14 }
 0x537   :  { %1060 = vtanh.f32 %v466_v16  ;;  %v1014_v18 = vmul.f32 -1.442695, %v466_v16 }
 0x539   :  { %1062 = vpow2.f32 %v1014_v18 }
 0x53d   :  { %v1061_v17 = vpop.eup %1060 }
 0x53e   :  { %489 = vrot.lane.b32.xlu2 %v1061_v17, %s1192_s18 }
 0x53f   :  { %v1063_v19 = vpop.eup %1062 }
 0x540   :  { %v470_v20 = vadd.f32 1.0, %v1063_v19 }
 0x542   :  { %1064 = vrcp.f32 %v470_v20  ;;  %v482_v26 = vand.u32 2147483648, %v470_v20  ;;  %vm476_vm11 = vweird.f32 %v470_v20  ;;  %v480_v27 = vand.u32 2147483647, %v470_v20 }
 0x544   :  { %v483_v29 = vor.u32 1.1754944e-38, %v482_v26  ;;  %vm481_vm13 = vcmp.eq.f32.partialorder %v480_v27, 8.507059e+37 }
 0x548   :  { %v1065_v21 = vpop.eup %1064 }
 0x549   :  { %v472_v22 = vmul.f32 %v1065_v21, %v470_v20  ;;  %vm477_vm10 = vweird.f32 %v1065_v21 }
 0x54a   :  { %vm478_vm12 = vmor %vm476_vm11, %vm477_vm10 }
 0x54b   :  { %v473_v23 = vsub.f32 1.0, %v472_v22 }
 0x54d   :  { %v474_v24 = vmul.f32 %v1065_v21, %v473_v23 }
 0x54f   :  { %v475_v25 = vadd.f32 %v1065_v21, %v474_v24 }
 0x551   :  { %v479_v28 = vsel %vm478_vm12, %v1065_v21, %v475_v25 }
 0x552   :  { %v484_v31 = vsel %vm481_vm13, %v483_v29, %v479_v28 }
 0x553   :  { %v487_v33 = vmul.f32 %v484_v31, %v427_v63 }
 0x598   :  { %v490_v30 = vpop.permute.xlu2 %489 }
 0x599   :  { %v492_v32 = vmul.f32 %v490_v30, %v484_v31 }
 0x59b   :  { %494 = vrot.lane.b32.xlu0 %v492_v32, %s1193_s5 }
 0x60d   :  { %v495_v34 = vpop.permute.xlu0 %494 }
 0x60e   :  { %v497_v35 = vadd.f32 %v495_v34, %v487_v33 }
 0x610   :  { %1066 = vtanh.f32 %v497_v35 }
 0x616   :  { %v1067_v36 = vpop.eup %1066 }
 0x617   :  { %500 = vrot.lane.b32.xlu1 %v1067_v36, %s1192_s18 }
 0x689   :  { %v501_v40 = vpop.permute.xlu1 %500 }
 0x68a   :  { %v1397_v42 = vmul.f32 %v501_v40, %v484_v31 }
 0x68c   :  { %512 = vrot.lane.b32.xlu2 %v1397_v42, %s1193_s5 }
 0x6e6   :  { %v513_v43 = vpop.permute.xlu2 %512 }
 0x6e7   :  { %1015 = vmatmul.msk.f32.vlgmr.msra.gmra.mxu3 %vm302_vm5, %v513_v43 }
 0x76a   :  { %v533_v46 = vpop.f32.mrf.mxu3 }
 0x76b   :  { %v536_v4 = vadd.f32 %v533_v46, %v200_v3 }
 0x76d   :  { %1068 = vtanh.f32 %v536_v4  ;;  %v1016_v7 = vmul.f32 -1.442695, %v536_v4 }
 0x76f   :  { %1070 = vpow2.f32 %v1016_v7 }
 0x773   :  { %v1069_v5 = vpop.eup %1068 }
 0x774   :  { %559 = vrot.lane.b32.xlu0 %v1069_v5, %s1192_s18 }
 0x775   :  { %v1071_v47 = vpop.eup %1070 }
 0x776   :  { %v540_v48 = vadd.f32 1.0, %v1071_v47 }
 0x778   :  { %1072 = vrcp.f32 %v540_v48  ;;  %v552_v54 = vand.u32 2147483648, %v540_v48  ;;  %vm546_vm15 = vweird.f32 %v540_v48  ;;  %v550_v55 = vand.u32 2147483647, %v540_v48 }
 0x77a   :  { %v553_v57 = vor.u32 1.1754944e-38, %v552_v54  ;;  %vm551_vm2 = vcmp.eq.f32.partialorder %v550_v55, 8.507059e+37 }
 0x77e   :  { %v1073_v49 = vpop.eup %1072 }
 0x77f   :  { %v542_v50 = vmul.f32 %v1073_v49, %v540_v48  ;;  %vm547_vm14 = vweird.f32 %v1073_v49 }
 0x780   :  { %vm548_vm1 = vmor %vm546_vm15, %vm547_vm14 }
 0x781   :  { %v543_v51 = vsub.f32 1.0, %v542_v50 }
 0x783   :  { %v544_v52 = vmul.f32 %v1073_v49, %v543_v51 }
 0x785   :  { %v545_v53 = vadd.f32 %v1073_v49, %v544_v52 }
 0x787   :  { %v549_v56 = vsel %vm548_vm1, %v1073_v49, %v545_v53 }
 0x788   :  { %v554_v59 = vsel %vm551_vm2, %v553_v57, %v549_v56 }
 0x789   :  { %v557_v61 = vmul.f32 %v554_v59, %v497_v35 }
 0x7e6   :  { %v560_v58 = vpop.permute.xlu0 %559 }
 0x7e7   :  { %v562_v60 = vmul.f32 %v560_v58, %v554_v59 }
 0x7e9   :  { %564 = vrot.lane.b32.xlu1 %v562_v60, %s1193_s5 }
 0x85b   :  { %v565_v62 = vpop.permute.xlu1 %564 }
 0x85c   :  { %v567_v63 = vadd.f32 %v565_v62, %v557_v61  ;;  %v275_v62 = vadd.f32 %v1321_v11, %v1375_v13 }
 0x85e   :  { %1074 = vtanh.f32 %v567_v63 }
 0x864   :  { %v1075_v0 = vpop.eup %1074 }
 0x865   :  { %570 = vrot.lane.b32.xlu2 %v1075_v0, %s1192_s18 }
 0x8bf   :  { %v571_v1 = vpop.permute.xlu2 %570 }
 0x8c0   :  { %v1408_v2 = vmul.f32 %v571_v1, %v554_v59 }
 0x8c2   :  { %582 = vrot.lane.b32.xlu0 %v1408_v2, %s1193_s5 }
 0x934   :  { %v583_v6 = vpop.permute.xlu0 %582 }
 0x935   :  { %1017 = vmatmul.msk.f32.vlgmr.msrb.gmra.mxu0 %vm302_vm5, %v583_v6 }
 0x9b2   :  { %v603_v12 = vpop.f32.mrf.mxu0 }
 0x9b3   :  { %v606_v14 = vadd.f32 %v603_v12, %v225_v9 }
 0x9b5   :  { %1076 = vtanh.f32 %v606_v14  ;;  %v1018_v16 = vmul.f32 -1.442695, %v606_v14 }
 0x9b7   :  { %1078 = vpow2.f32 %v1018_v16 }
 0x9bb   :  { %v1077_v15 = vpop.eup %1076 }
 0x9bc   :  { %629 = vrot.lane.b32.xlu1 %v1077_v15, %s1192_s18 }
 0x9bd   :  { %v1079_v17 = vpop.eup %1078 }
 0x9be   :  { %v610_v18 = vadd.f32 1.0, %v1079_v17 }
 0x9c0   :  { %1080 = vrcp.f32 %v610_v18  ;;  %v622_v24 = vand.u32 2147483648, %v610_v18  ;;  %vm616_vm4 = vweird.f32 %v610_v18  ;;  %v620_v10 = vand.u32 2147483647, %v610_v18 }
 0x9c2   :  { %v623_v26 = vor.u32 1.1754944e-38, %v622_v24  ;;  %vm621_vm7 = vcmp.eq.f32.partialorder %v620_v10, 8.507059e+37 }
 0x9c6   :  { %v1081_v19 = vpop.eup %1080 }
 0x9c7   :  { %v612_v20 = vmul.f32 %v1081_v19, %v610_v18  ;;  %vm617_vm3 = vweird.f32 %v1081_v19 }
 0x9c8   :  { %vm618_vm6 = vmor %vm616_vm4, %vm617_vm3 }
 0x9c9   :  { %v613_v21 = vsub.f32 1.0, %v612_v20 }
 0x9cb   :  { %v614_v22 = vmul.f32 %v1081_v19, %v613_v21 }
 0x9cd   :  { %v615_v23 = vadd.f32 %v1081_v19, %v614_v22 }
 0x9cf   :  { %v619_v25 = vsel %vm618_vm6, %v1081_v19, %v615_v23 }
 0x9d0   :  { %v624_v28 = vsel %vm621_vm7, %v623_v26, %v619_v25 }
 0x9d1   :  { %v627_v30 = vmul.f32 %v624_v28, %v567_v63 }
 0xa2e   :  { %v630_v27 = vpop.permute.xlu1 %629 }
 0xa2f   :  { %v632_v29 = vmul.f32 %v630_v27, %v624_v28 }
 0xa31   :  { %634 = vrot.lane.b32.xlu2 %v632_v29, %s1193_s5  ;;  %v96_v29 = vld [vmem:[%s1512_s2] sm:$0x3] }
 0xa8b   :  { %v635_v31 = vpop.permute.xlu2 %634 }
 0xa8c   :  { %v637_v32 = vadd.f32 %v635_v31, %v627_v30  ;;  %v994_v30 = vadd.s32 4294967295, %v96_v29 }
 0xa8e   :  { %1082 = vtanh.f32 %v637_v32  ;;  %vm98_vm1 = vcmp.gt.s32.totalorder %v994_v30, 0 }
 0xa8f   :  { %v99_v31 = vsel %vm98_vm1, %v994_v30, 0  ;;  %v922_v30 = vld [vmem:[%s1519_s9 + $0x8] sm:$0xff] }
 0xa90   :  { %vm100_vm2 = vcmp.lt.s32.totalorder %v99_v31, 7 }
 0xa94   :  { %v1083_v33 = vpop.eup %1082 }
 0xa95   :  { %640 = vrot.lane.b32.xlu0 %v1083_v33, %s1192_s18 }
 0xb07   :  { %v641_v34 = vpop.permute.xlu0 %640 }
 0xb08   :  { %v1418_v35 = vmul.f32 %v641_v34, %v624_v28  ;;  %v1194_v28 = vmov 0   ;;  %v101_v34 = vsel %vm100_vm2, %v99_v31, 7  ;;  %v921_v31 = vld [vmem:[%s1519_s9] sm:$0xff] }
 0xb09   :  { %1036 = vset.pattern.permute.xlu0 %v1194_v28  ;;  %1037 = vset.pattern.permute.xlu1 %v1194_v28  ;;  %vm364_vm3 = vcmp.eq.s32.totalorder %v101_v34, 0  ;;  %vm714_vm4 = vcmp.eq.s32.totalorder %v101_v34, 5  ;;  %vm434_vm6 = vcmp.eq.s32.totalorder %v101_v34, 1  ;;  %vm574_vm7 = vcmp.eq.s32.totalorder %v101_v34, 3 }
 0xb0a   :  { %652 = vrot.lane.b32.xlu1 %v1418_v35, %s1193_s5  ;;  %1038 = vset.pattern.permute.xlu2 %v1194_v28 }
 0xb7c   :  { %v653_v36 = vpop.permute.xlu1 %652 }
 0xb7d   :  { %1019 = vmatmul.msk.f32.vlgmr.msrb.gmra.mxu1 %vm302_vm5, %v653_v36  ;;  %v365_v36 = vsel %vm364_vm3, 1, %v1194_v28 }
 0xbfa   :  { %v673_v39 = vpop.f32.mrf.mxu1 }
 0xbfb   :  { %v676_v40 = vadd.f32 %v673_v39, %v250_v37  ;;  %v715_v39 = vsel %vm714_vm4, 1, %v1194_v28 }
 0xbfd   :  { %1084 = vtanh.f32 %v676_v40  ;;  %v1020_v44 = vmul.f32 -1.442695, %v676_v40  ;;  %v300_v40 = vadd.f32 %v1321_v11, %v1402_v45 }
 0xbff   :  { %1086 = vpow2.f32 %v1020_v44 }
 0xc03   :  { %v1085_v43 = vpop.eup %1084 }
 0xc04   :  { %699 = vrot.lane.b32.xlu2 %v1085_v43, %s1192_s18 }
 0xc05   :  { %v1087_v3 = vpop.eup %1086 }
 0xc06   :  { %v680_v46 = vadd.f32 1.0, %v1087_v3 }
 0xc08   :  { %1088 = vrcp.f32 %v680_v46  ;;  %v692_v49 = vand.u32 2147483648, %v680_v46  ;;  %vm686_vm9 = vweird.f32 %v680_v46  ;;  %v690_v41 = vand.u32 2147483647, %v680_v46 }
 0xc0a   :  { %v693_v51 = vor.u32 1.1754944e-38, %v692_v49  ;;  %vm691_vm11 = vcmp.eq.f32.partialorder %v690_v41, 8.507059e+37 }
 0xc0e   :  { %v1089_v4 = vpop.eup %1088 }
 0xc0f   :  { %v682_v5 = vmul.f32 %v1089_v4, %v680_v46  ;;  %vm687_vm8 = vweird.f32 %v1089_v4  ;;  %v435_v46 = vsel %vm434_vm6, 1, %v1194_v28 }
 0xc10   :  { %vm688_vm10 = vmor %vm686_vm9, %vm687_vm8  ;;  %vm784_vm8 = vcmp.eq.s32.totalorder %v101_v34, 6  ;;  %vm854_vm9 = vcmp.eq.s32.totalorder %v101_v34, 7 }
 0xc11   :  { %v683_v7 = vsub.f32 1.0, %v682_v5  ;;  %v785_v5 = vsel %vm784_vm8, 1, %v1194_v28  ;;  %v855_v41 = vsel %vm854_vm9, 1, %v1194_v28 }
 0xc13   :  { %v684_v47 = vmul.f32 %v1089_v4, %v683_v7 }
 0xc15   :  { %v685_v48 = vadd.f32 %v1089_v4, %v684_v47 }
 0xc17   :  { %v689_v50 = vsel %vm688_vm10, %v1089_v4, %v685_v48  ;;  %v575_v4 = vsel %vm574_vm7, 1, %v1194_v28 }
 0xc18   :  { %v694_v53 = vsel %vm691_vm11, %v693_v51, %v689_v50 }
 0xc19   :  { %v697_v55 = vmul.f32 %v694_v53, %v637_v32 }
 0xc5e   :  { %v700_v52 = vpop.permute.xlu2 %699 }
 0xc5f   :  { %v702_v54 = vmul.f32 %v700_v52, %v694_v53 }
 0xc61   :  { %704 = vrot.lane.b32.xlu0 %v702_v54, %s1193_s5 }
 0xcd3   :  { %v705_v56 = vpop.permute.xlu0 %704 }
 0xcd4   :  { %v707_v57 = vadd.f32 %v705_v56, %v697_v55 }
 0xcd6   :  { %1090 = vtanh.f32 %v707_v57 }
 0xcdc   :  { %v1091_v58 = vpop.eup %1090 }
 0xcdd   :  { %710 = vrot.lane.b32.xlu1 %v1091_v58, %s1192_s18 }
 0xd4f   :  { %v711_v59 = vpop.permute.xlu1 %710 }
 0xd50   :  { %v1428_v60 = vmul.f32 %v711_v59, %v694_v53 }
 0xd52   :  { %722 = vrot.lane.b32.xlu2 %v1428_v60, %s1193_s5 }
 0xdac   :  { %v723_v61 = vpop.permute.xlu2 %722 }
 0xdad   :  { %1021 = vmatmul.msk.f32.vlgmr.msrb.gmra.mxu2 %vm302_vm5, %v723_v61 }
 0xe30   :  { %v743_v63 = vpop.f32.mrf.mxu2 }
 0xe31   :  { %v746_v0 = vadd.f32 %v743_v63, %v275_v62 }
 0xe33   :  { %1092 = vtanh.f32 %v746_v0  ;;  %v1022_v6 = vmul.f32 -1.442695, %v746_v0 }
 0xe35   :  { %1094 = vpow2.f32 %v1022_v6  ;;  %v866_v6 = vld [vmem:[#allocation3] sm:$0xff] }
 0xe36   :  { %885 = vmatpush.msra.mxu0 %v866_v6 }
 0xe39   :  { %v1093_v1 = vpop.eup %1092 }
 0xe3a   :  { %769 = vrot.lane.b32.xlu0 %v1093_v1, %s1192_s18 }
 0xe3b   :  { %v1095_v9 = vpop.eup %1094 }
 0xe3c   :  { %v750_v12 = vadd.f32 1.0, %v1095_v9  ;;  %v864_v9 = vld [vmem:[%s1516_s6 + $0x18] sm:$0xff] }
 0xe3d   :  { %907 = vmatpush.msra.mxu1 %v864_v9 }
 0xe3e   :  { %1096 = vrcp.f32 %v750_v12  ;;  %v762_v19 = vand.u32 2147483648, %v750_v12  ;;  %vm756_vm13 = vweird.f32 %v750_v12  ;;  %v760_v13 = vand.u32 2147483647, %v750_v12 }
 0xe40   :  { %v763_v21 = vor.u32 1.1754944e-38, %v762_v19  ;;  %vm761_vm15 = vcmp.eq.f32.partialorder %v760_v13, 8.507059e+37 }
 0xe44   :  { %v1097_v14 = vpop.eup %1096 }
 0xe45   :  { %v752_v15 = vmul.f32 %v1097_v14, %v750_v12  ;;  %vm757_vm12 = vweird.f32 %v1097_v14  ;;  %v863_v12 = vld [vmem:[%s1516_s6 + $0x10] sm:$0xff] }
 0xe46   :  { %vm758_vm14 = vmor %vm756_vm13, %vm757_vm12  ;;  %908 = vmatpush.msra.mxu1 %v863_v12 }
 0xe47   :  { %v753_v16 = vsub.f32 1.0, %v752_v15  ;;  %v861_v15 = vld [vmem:[%s1516_s6] sm:$0xff] }
 0xe49   :  { %v754_v17 = vmul.f32 %v1097_v14, %v753_v16 }
 0xe4b   :  { %v755_v18 = vadd.f32 %v1097_v14, %v754_v17 }
 0xe4d   :  { %v759_v20 = vsel %vm758_vm14, %v1097_v14, %v755_v18  ;;  %vm504_vm14 = vcmp.eq.s32.totalorder %v101_v34, 2  ;;  %v862_v14 = vld [vmem:[%s1516_s6 + $0x8] sm:$0xff] }
 0xe4e   :  { %v764_v23 = vsel %vm761_vm15, %v763_v21, %v759_v20  ;;  %v505_v59 = vsel %vm504_vm14, 1, %v1194_v28  ;;  %vm644_vm15 = vcmp.eq.s32.totalorder %v101_v34, 4  ;;  %909 = vmatpush.msra.mxu1 %v862_v14 }
 0xe4f   :  { %v767_v10 = vmul.f32 %v764_v23, %v707_v57  ;;  %v645_v61 = vsel %vm644_vm15, 1, %v1194_v28 }
 0xe50   :  { %910 = vmatpush.msra.mxu1 %v861_v15 }
 0xeac   :  { %v770_v22 = vpop.permute.xlu0 %769 }
 0xead   :  { %v772_v24 = vmul.f32 %v770_v22, %v764_v23 }
 0xeaf   :  { %774 = vrot.lane.b32.xlu1 %v772_v24, %s1193_s5 }
 0xf21   :  { %v775_v25 = vpop.permute.xlu1 %774 }
 0xf22   :  { %v1437_v26 = vadd.f32 %v775_v25, %v767_v10 }
 0xf24   :  { %1098 = vtanh.f32 %v1437_v26 }
 0xf2a   :  { %v1099_v27 = vpop.eup %1098 }
 0xf2b   :  { %780 = vrot.lane.b32.xlu2 %v1099_v27, %s1192_s18 }
 0xf85   :  { %v781_v32 = vpop.permute.xlu2 %780 }
 0xf86   :  { %v1447_v33 = vmul.f32 %v781_v32, %v764_v23 }
 0xf88   :  { %792 = vrot.lane.b32.xlu0 %v1447_v33, %s1193_s5 }
 0xf90   :  { %367 = vperm.xlu0 %1036, %v365_v36  }
 0xf98   :  { %717 = vperm.xlu0 %1036, %v715_v39  }
 0xfa0   :  { %857 = vperm.xlu0 %1036, %v855_v41  }
 0xffa   :  { %v793_v37 = vpop.permute.xlu0 %792 }
 0xffb   :  { %1023 = vmatmul.msk.f32.vlgmr.msrb.gmra.mxu3 %vm302_vm5, %v793_v37 }
0x1002   :  { %v368_v18 = vpop.permute.xlu0 %367 }
0x1003   :  { %vm369_vm1 = vcmp.eq.s32.totalorder %v368_v18, 1 }
0x1004   :  { %v370_v13 = vsel %vm369_vm1, %v1343_v38, 0.0 }
0x100a   :  { %v718_v22 = vpop.permute.xlu0 %717 }
0x100b   :  { %vm719_vm7 = vcmp.eq.s32.totalorder %v718_v22, 1 }
0x1012   :  { %v858_v27 = vpop.permute.xlu0 %857 }
0x1013   :  { %vm859_vm9 = vcmp.eq.s32.totalorder %v858_v27, 1 }
0x107e   :  { %v813_v43 = vpop.f32.mrf.mxu3 }
0x107f   :  { %v816_v44 = vadd.f32 %v813_v43, %v300_v40  ;;  %v1041_v40 = vld [vmem:[#allocation7] ss:$0 sm:$0xff] }
0x1081   :  { %1100 = vtanh.f32 %v816_v44  ;;  %v1024_v7 = vmul.f32 -1.442695, %v816_v44 }
0x1083   :  { %1102 = vpow2.f32 %v1024_v7  ;;  %v1043_v7 = vld [vmem:[#allocation2] ss:$0 sm:$0xff] }
0x1087   :  { %v1101_v3 = vpop.eup %1100 }
0x1088   :  { %839 = vrot.lane.b32.xlu1 %v1101_v3, %s1192_s18  ;;  %v1042_v3 = vld [vmem:[%s1521_s11] ss:$0 sm:$0xff] }
0x1089   :  { %v1103_v11 = vpop.eup %1102 }
0x108a   :  { %v820_v45 = vadd.f32 1.0, %v1103_v11 }
0x108c   :  { %1104 = vrcp.f32 %v820_v45  ;;  %v832_v52 = vand.u32 2147483648, %v820_v45  ;;  %vm826_vm11 = vweird.f32 %v820_v45  ;;  %v830_v53 = vand.u32 2147483647, %v820_v45 }
0x108e   :  { %v833_v55 = vor.u32 1.1754944e-38, %v832_v52  ;;  %vm831_vm13 = vcmp.eq.f32.partialorder %v830_v53, 8.507059e+37 }
0x1090   :  { %437 = vperm.xlu1 %1037, %v435_v46  }
0x1092   :  { %v1105_v47 = vpop.eup %1104 }
0x1093   :  { %v822_v48 = vmul.f32 %v1105_v47, %v820_v45  ;;  %vm827_vm10 = vweird.f32 %v1105_v47 }
0x1094   :  { %vm828_vm12 = vmor %vm826_vm11, %vm827_vm10  ;;  %vm986_vm11 = vcmask 1024  }
0x1095   :  { %v823_v49 = vsub.f32 1.0, %v822_v48 }
0x1097   :  { %v824_v50 = vmul.f32 %v1105_v47, %v823_v49 }
0x1098   :  { %577 = vperm.xlu1 %1037, %v575_v4  }
0x1099   :  { %v825_v51 = vadd.f32 %v1105_v47, %v824_v50 }
0x109b   :  { %v829_v54 = vsel %vm828_vm12, %v1105_v47, %v825_v51 }
0x109c   :  { %v834_v57 = vsel %vm831_vm13, %v833_v55, %v829_v54 }
0x109d   :  { %v837_v62 = vmul.f32 %v834_v57, %v1437_v26 }
0x10a0   :  { %787 = vperm.xlu1 %1037, %v785_v5  }
0x10fa   :  { %v840_v56 = vpop.permute.xlu1 %839 }
0x10fb   :  { %v842_v58 = vmul.f32 %v840_v56, %v834_v57 }
0x10fd   :  { %844 = vrot.lane.b32.xlu2 %v842_v58, %s1193_s5 }
0x1102   :  { %v438_v16 = vpop.permute.xlu1 %437 }
0x1103   :  { %vm439_vm2 = vcmp.eq.s32.totalorder %v438_v16, 1 }
0x1104   :  { %v440_v21 = vsel %vm439_vm2, %v1370_v8, %v370_v13 }
0x1105   :  { %507 = vperm.xlu2 %1038, %v505_v59  }
0x110a   :  { %v578_v19 = vpop.permute.xlu1 %577 }
0x110b   :  { %vm579_vm4 = vcmp.eq.s32.totalorder %v578_v19, 1 }
0x110d   :  { %647 = vperm.xlu2 %1038, %v645_v61  }
0x1112   :  { %v788_v25 = vpop.permute.xlu1 %787 }
0x1113   :  { %vm789_vm8 = vcmp.eq.s32.totalorder %v788_v25, 1 }
0x1157   :  { %v845_v63 = vpop.permute.xlu2 %844 }
0x1158   :  { %v847_v0 = vadd.f32 %v845_v63, %v837_v62 }
0x115a   :  { %1106 = vtanh.f32 %v847_v0 }
0x115f   :  { %v508_v17 = vpop.permute.xlu2 %507 }
0x1160   :  { %v1107_v1 = vpop.eup %1106  ;;  %vm509_vm3 = vcmp.eq.s32.totalorder %v508_v17, 1 }
0x1161   :  { %850 = vrot.lane.b32.xlu2 %v1107_v1, %s1192_s18  ;;  %v510_v23 = vsel %vm509_vm3, %v1397_v42, %v440_v21  ;;  %v865_v42 = vld [vmem:[%s1511_s1] sm:$0x3] }
0x1162   :  { %v580_v24 = vsel %vm579_vm4, %v1408_v2, %v510_v23  ;;  %1025 = vmatmul.msk.f32.vlgmr.msra.gmra.mxu0 %vm103_vm0, %v865_v42  ;;  %v924_v2 = vld [vmem:[%s1519_s9 + $0x18] sm:$0xff]  ;;  %vm958_vm0 = vcmask 58368  }
0x1163   :  { %944 = vmatpush.msra.mxu2 %v924_v2 }
0x1167   :  { %v648_v20 = vpop.permute.xlu2 %647 }
0x1168   :  { %vm649_vm6 = vcmp.eq.s32.totalorder %v648_v20, 1 }
0x1169   :  { %v650_v10 = vsel %vm649_vm6, %v1418_v35, %v580_v24 }
0x116a   :  { %v720_v26 = vsel %vm719_vm7, %v1428_v60, %v650_v10  ;;  %v923_v60 = vld [vmem:[%s1519_s9 + $0x10] sm:$0xff] }
0x116b   :  { %v790_v29 = vsel %vm789_vm8, %v1447_v33, %v720_v26  ;;  %945 = vmatpush.msra.mxu2 %v923_v60  ;;  %v1040_v33 = vld [vmem:[#allocation5] ss:$0 sm:$0xff] }
0x116d   :  { %946 = vmatpush.msra.mxu2 %v922_v30 }
0x116f   :  { %947 = vmatpush.msra.mxu2 %v921_v31 }
0x11bb   :  { %v851_v28 = vpop.permute.xlu2 %850 }
0x11bc   :  { %v853_v38 = vmul.f32 %v851_v28, %v834_v57 }
0x11be   :  { %v860_v8 = vsel %vm859_vm9, %v853_v38, %v790_v29 }
0x11bf   :  { %891 = vrot.lane.b32.xlu1 %v860_v8, %s1193_s5 }
0x11df   :  { %v887_v32 = vpop.f32.mrf.mxu0 }
0x1231   :  { %v892_v35 = vpop.permute.xlu1 %891 }
0x1232   :  { %1026 = vmatmul.msk.f32.vlgmr.msra.gmra.mxu1 %vm302_vm5, %v892_v35 }
0x12af   :  { %v912_v34 = vpop.f32.mrf.mxu1 }
0x12b0   :  { %v913_v36 = vadd.f32 %v912_v34, %v887_v32 }
0x12b2   :  { %v919_v37 = vadd.f32 %v1040_v33, %v913_v36 }
0x12b4   :  { %v920_v39 = vmax.f32 %v919_v37, 0.0 }
0x12b6   :  { %1027 = vmatmul.msk.f32.vlgmr.msra.gmra.mxu2 %vm302_vm5, %v920_v39 }
0x1339   :  { %v949_v43 = vpop.f32.mrf.mxu2 }
0x133a   :  { %v950_v44 = vadd.f32 %v1041_v40, %v949_v43 }
0x133c   :  { %v952_v46 = vmax.f32 %v950_v44, 0.0 }
0x133e   :  { %v957_v4 = vmul.f32 %v1042_v3, %v952_v46 }
0x1340   :  { %v959_v5 = vsel %vm958_vm0, %v957_v4, 0.0 }
0x1341   :  { %960 = vadd.xlane.f32.xlu2 %v959_v5 }
0x13b4   :  { %v961_v11 = vpop.xlane.xlu2 %960 }
0x13b5   :  { %v966_v45 = vadd.f32 %v1043_v7, %v961_v11 }
0x13b7   :  { %v1028_v47 = vmul.f32 -1.442695, %v966_v45 }
0x13b9   :  { %1108 = vpow2.f32 %v1028_v47 }
0x13bf   :  { %v1109_v48 = vpop.eup %1108 }
0x13c0   :  { %v970_v49 = vadd.f32 1.0, %v1109_v48 }
0x13c2   :  { %1110 = vrcp.f32 %v970_v49  ;;  %v982_v52 = vand.u32 2147483648, %v970_v49  ;;  %v980_v54 = vand.u32 2147483647, %v970_v49  ;;  %vm976_vm10 = vweird.f32 %v970_v49 }
0x13c4   :  { %v983_v56 = vor.u32 1.1754944e-38, %v982_v52  ;;  %vm981_vm13 = vcmp.eq.f32.partialorder %v980_v54, 8.507059e+37 }
0x13c8   :  { %v1111_v41 = vpop.eup %1110 }
0x13c9   :  { %v972_v50 = vmul.f32 %v1111_v41, %v970_v49  ;;  %vm977_vm5 = vweird.f32 %v1111_v41 }
0x13ca   :  { %vm978_vm12 = vmor %vm976_vm10, %vm977_vm5 }
0x13cb   :  { %v973_v51 = vsub.f32 1.0, %v972_v50 }
0x13cd   :  { %v974_v53 = vmul.f32 %v1111_v41, %v973_v51 }
0x13cf   :  { %v975_v55 = vadd.f32 %v1111_v41, %v974_v53 }
0x13d1   :  { %v979_v57 = vsel %vm978_vm12, %v1111_v41, %v975_v55 }
0x13d2   :  { %v984_v58 = vsel %vm981_vm13, %v983_v56, %v979_v57 }
0x13d3   :  { %987 = vst.msk [vmem:[%s1523_s13] sm:$0x3] %vm986_vm11, %v984_v58 }
0x13d4   :  { %992 = vsyncpa [#allocation4], 1 }
0x13d5   :  { %993 = vsyncpa [#allocation6], 1 }

</bundles_post_ra>
